<compile_context>
chip_gen: v7x
topology: tpu7x:2x2x1
jax: 0.10.0
libtpu: 0.0.40
codegen_flags: <defaults>
</compile_context>

<pallas_src>
import functools
import math

import jax
import jax.numpy as jnp
from jax.experimental import pallas as pl
from jax.experimental.pallas import tpu as pltpu

# ---- small synthetic BERT config (stand-in for SciBERT's 768/12/12) ----
VOCAB = 100
MAX_POS = 64
D_MODEL = 32
N_HEADS = 4
D_HEAD = D_MODEL // N_HEADS
D_FF = 64
N_LAYERS = 2
D_OUT = 16
LN_EPS = 1e-12  # BERT default


# --------------------------- in-kernel helpers ---------------------------

def _layernorm(x, g, b, eps):
    # LayerNorm over the last (feature) dim, f32 statistics.
    mean = jnp.mean(x, axis=-1, keepdims=True)
    xc = x - mean
    var = jnp.mean(xc * xc, axis=-1, keepdims=True)
    return xc * jax.lax.rsqrt(var + eps) * g + b


def _full_spec(shape):
    # whole-array block; at these shapes one grid step is optimal.
    return pl.BlockSpec(shape, lambda i, _n=len(shape): (0,) * _n)


# --------------------------- Pallas kernels ---------------------------

def _ln_kernel(x_ref, g_ref, b_ref, o_ref, *, eps):
    # embedding LayerNorm, no residual input (avoids a dead zeros array).
    o_ref[...] = _layernorm(x_ref[...], g_ref[...], b_ref[...], eps).astype(o_ref.dtype)


def embedding_layernorm(x, gamma, beta):
    M, D = x.shape
    return pl.pallas_call(
        functools.partial(_ln_kernel, eps=LN_EPS),
        out_shape=jax.ShapeDtypeStruct((M, D), x.dtype),
        grid=(1,),
        in_specs=[_full_spec((M, D)), _full_spec((1, D)), _full_spec((1, D))],
        out_specs=_full_spec((M, D)),
    )(x, gamma.reshape(1, D), beta.reshape(1, D))


def _encoder_layer_kernel(h_ref, mask_ref, wqkv_ref, bqkv_ref, wo_ref, bo_ref,
                          ln1_g_ref, ln1_b_ref, w1_ref, b1_ref, w2_ref, b2_ref,
                          ln2_g_ref, ln2_b_ref, o_ref, *, B, S, H, Dh, eps):
    """One full BERT encoder layer on a VMEM-resident [B*S, D] activation."""
    D = H * Dh
    x = h_ref[...]                                                  # (B*S, D)

    # fused QKV projection (single MXU matmul against [D, 3D] weight)
    qkv = jnp.dot(x, wqkv_ref[...], preferred_element_type=jnp.float32) + bqkv_ref[...]
    q, k, v = qkv[:, :D], qkv[:, D:2 * D], qkv[:, 2 * D:]

    scale = 1.0 / math.sqrt(Dh)
    mask = mask_ref[...]                                            # (B, S) additive bias

    # all heads / batches in one grid step: static slices of the VMEM value,
    # unrolled (B*H tiny matmuls are cheaper than 8 serial grid steps).
    ctx_rows = []
    for b in range(B):
        qb, kb, vb = (t[b * S:(b + 1) * S, :] for t in (q, k, v))
        mb = mask[b:b + 1, :]                                       # (1, S)
        heads = []
        for hh in range(H):
            sl = slice(hh * Dh, (hh + 1) * Dh)
            qh, kh, vh = qb[:, sl], kb[:, sl], vb[:, sl]
            s = jax.lax.dot_general(qh, kh, (((1,), (1,)), ((), ())),
                                    preferred_element_type=jnp.float32) * scale
            s = s + mb                                              # padding mask bias
            s = s - jnp.max(s, axis=-1, keepdims=True)
            p = jnp.exp(s)
            p = p * pl.reciprocal(jnp.sum(p, axis=-1, keepdims=True), approx=True)
            heads.append(jnp.dot(p, vh, preferred_element_type=jnp.float32))
        ctx_rows.append(jnp.concatenate(heads, axis=-1))            # (S, D)
    ctx = jnp.concatenate(ctx_rows, axis=0)                         # (B*S, D)

    # attention output projection + residual + LayerNorm
    attn_out = jnp.dot(ctx, wo_ref[...], preferred_element_type=jnp.float32) + bo_ref[...]
    h1 = _layernorm(attn_out + x, ln1_g_ref[...], ln1_b_ref[...], eps)

    # feed-forward + residual + LayerNorm
    # TODO(synk): HF BERT/SciBERT uses exact erf-GELU; tanh-approx GELU used here.
    ff = jax.nn.gelu(jnp.dot(h1, w1_ref[...], preferred_element_type=jnp.float32) + b1_ref[...])
    ff2 = jnp.dot(ff, w2_ref[...], preferred_element_type=jnp.float32) + b2_ref[...]
    o_ref[...] = _layernorm(ff2 + h1, ln2_g_ref[...], ln2_b_ref[...], eps).astype(o_ref.dtype)


def encoder_layer(h, mask_bias, layer, B, S):
    M, D = h.shape
    kernel = functools.partial(_encoder_layer_kernel,
                               B=B, S=S, H=N_HEADS, Dh=D_HEAD, eps=LN_EPS)
    # TODO(synk): at real SciBERT scale (D=768, D_FF=3072, S<=512) this must be
    # tiled: M rows on a "parallel" grid axis, FFN K-reduction on a trailing
    # "arbitrary" axis with a VMEM f32 accumulator, bf16 matmul inputs, and
    # tile sizes budgeted against v7x's 64 MiB VMEM. At B*S=16/D=32 a single
    # full-block grid step is optimal.
    return pl.pallas_call(
        kernel,
        out_shape=jax.ShapeDtypeStruct((M, D), h.dtype),
        grid=(1,),
        in_specs=[
            _full_spec((M, D)),                         # h
            _full_spec((B, S)),                         # additive mask bias
            _full_spec((D, 3 * D)), _full_spec((1, 3 * D)),   # wqkv, bqkv
            _full_spec((D, D)), _full_spec((1, D)),     # wo, bo
            _full_spec((1, D)), _full_spec((1, D)),     # ln1 gamma, beta
            _full_spec((D, D_FF)), _full_spec((1, D_FF)),     # w1, b1
            _full_spec((D_FF, D)), _full_spec((1, D)),  # w2, b2
            _full_spec((1, D)), _full_spec((1, D)),     # ln2 gamma, beta
        ],
        out_specs=_full_spec((M, D)),
        compiler_params=pltpu.CompilerParams(dimension_semantics=("arbitrary",)),
    )(h, mask_bias,
      layer["wqkv"], layer["bqkv"].reshape(1, 3 * D),
      layer["wo"], layer["bo"].reshape(1, D),
      layer["ln1_g"].reshape(1, D), layer["ln1_b"].reshape(1, D),
      layer["w1"], layer["b1"].reshape(1, D_FF),
      layer["w2"], layer["b2"].reshape(1, D),
      layer["ln2_g"].reshape(1, D), layer["ln2_b"].reshape(1, D))


def _pooler_head_kernel(h_ref, pw_ref, pb_ref, ow_ref, ob_ref, o_ref, *, B, S):
    # extract CLS rows in-kernel, pooler dense + tanh, final linear head.
    h = h_ref[...]                                                  # (B*S, D)
    cls = jnp.concatenate([h[b * S:b * S + 1, :] for b in range(B)], axis=0)  # (B, D)
    pooled = jnp.tanh(jnp.dot(cls, pw_ref[...], preferred_element_type=jnp.float32)
                      + pb_ref[...])
    o_ref[...] = (jnp.dot(pooled, ow_ref[...], preferred_element_type=jnp.float32)
                  + ob_ref[...]).astype(o_ref.dtype)


def pooler_head(h, pool_w, pool_b, out_w, out_b, B, S):
    M, D = h.shape
    N = out_w.shape[1]
    kernel = functools.partial(_pooler_head_kernel, B=B, S=S)
    return pl.pallas_call(
        kernel,
        out_shape=jax.ShapeDtypeStruct((B, N), h.dtype),
        grid=(1,),
        in_specs=[
            _full_spec((M, D)),
            _full_spec((D, D)), _full_spec((1, D)),
            _full_spec((D, N)), _full_spec((1, N)),
        ],
        out_specs=_full_spec((B, N)),
    )(h, pool_w, pool_b.reshape(1, D), out_w, out_b.reshape(1, N))


# --------------------------- model (JAX glue) ---------------------------

def init_params(key):
    def dense(k, din, dout):
        return (jax.random.normal(k, (din, dout), jnp.float32) * 0.02,
                jnp.zeros((dout,), jnp.float32))

    keys = jax.random.split(key, 5 + N_LAYERS)
    params = {
        "word_emb": jax.random.normal(keys[0], (VOCAB, D_MODEL), jnp.float32) * 0.02,
        "pos_emb": jax.random.normal(keys[1], (MAX_POS, D_MODEL), jnp.float32) * 0.02,
        "type_emb": jax.random.normal(keys[2], (2, D_MODEL), jnp.float32) * 0.02,
        "emb_ln_g": jnp.ones((D_MODEL,), jnp.float32),
        "emb_ln_b": jnp.zeros((D_MODEL,), jnp.float32),
        "layers": [],
    }
    for l in range(N_LAYERS):
        lk = jax.random.split(keys[3 + l], 6)
        wq, bq = dense(lk[0], D_MODEL, D_MODEL)
        wk, bk = dense(lk[1], D_MODEL, D_MODEL)
        wv, bv = dense(lk[2], D_MODEL, D_MODEL)
        wo, bo = dense(lk[3], D_MODEL, D_MODEL)
        w1, b1 = dense(lk[4], D_MODEL, D_FF)
        w2, b2 = dense(lk[5], D_FF, D_MODEL)
        params["layers"].append({
            # pre-concatenated QKV weight -> one fused matmul in-kernel
            "wqkv": jnp.concatenate([wq, wk, wv], axis=1),
            "bqkv": jnp.concatenate([bq, bk, bv], axis=0),
            "wo": wo, "bo": bo, "w1": w1, "b1": b1, "w2": w2, "b2": b2,
            "ln1_g": jnp.ones((D_MODEL,), jnp.float32),
            "ln1_b": jnp.zeros((D_MODEL,), jnp.float32),
            "ln2_g": jnp.ones((D_MODEL,), jnp.float32),
            "ln2_b": jnp.zeros((D_MODEL,), jnp.float32),
        })
    pk = jax.random.split(keys[3 + N_LAYERS], 2)
    params["pool_w"], params["pool_b"] = dense(pk[0], D_MODEL, D_MODEL)
    params["out_w"], params["out_b"] = dense(pk[1], D_MODEL, D_OUT)
    return params


def transformer_model_forward(params, src, src_key_padding_mask):
    """BERT(src, attention_mask)['pooler_output'] -> Linear(d_model, d_out)."""
    B, S = src.shape

    # embeddings: word + position + token-type(0); the gathers are XLA glue.
    h = (params["word_emb"][src]
         + params["pos_emb"][:S][None, :, :]
         + params["type_emb"][0][None, None, :])
    h = h.reshape(B * S, D_MODEL)
    h = embedding_layernorm(h, params["emb_ln_g"], params["emb_ln_b"])

    # HF-style extended attention mask: (1 - mask) * large_negative, additive
    mask_bias = (1.0 - src_key_padding_mask.astype(jnp.float32)) * -1e9   # [B, S]

    for layer in params["layers"]:
        h = encoder_layer(h, mask_bias, layer, B, S)

    # pooler (CLS -> dense -> tanh) + final linear head, fused
    return pooler_head(h, params["pool_w"], params["pool_b"],
                       params["out_w"], params["out_b"], B, S)


if __name__ == "__main__":
    key = jax.random.PRNGKey(0)
    pkey, ikey = jax.random.split(key)
    params = init_params(pkey)

    B, S = 2, 8
    src = jax.random.randint(ikey, (B, S), 0, VOCAB, dtype=jnp.int32)
    # second sequence has 2 padding positions
    src_key_padding_mask = jnp.array([[1, 1, 1, 1, 1, 1, 1, 1],
                                      [1, 1, 1, 1, 1, 1, 0, 0]], dtype=jnp.int32)

    fwd = jax.jit(transformer_model_forward)
    out = fwd(params, src, src_key_padding_mask)
    jax.block_until_ready(out)
    assert out.shape == (B, D_OUT) and out.dtype == jnp.float32
    print("KERNEL_OK")
</pallas_src>

<mosaic_0001>
module attributes {stable_mosaic.version = 11 : i64} {
  func.func @_pooler_head_kernel(%arg0: i32, %arg1: memref<16x32xf32, #tpu.memory_space<vmem>>, %arg2: memref<32x32xf32, #tpu.memory_space<vmem>>, %arg3: memref<1x32xf32, #tpu.memory_space<vmem>>, %arg4: memref<32x16xf32, #tpu.memory_space<vmem>>, %arg5: memref<1x16xf32, #tpu.memory_space<vmem>>, %arg6: memref<2x16xf32, #tpu.memory_space<vmem>>) attributes {dimension_semantics = [#tpu.dimension_semantics<arbitrary>], iteration_bounds = array<i64: 1>, scalar_prefetch = 0 : i64, scratch_operands = 0 : i64, tpu.core_type = #tpu.core_type<tc>, window_params = [{pipeline_mode = #tpu.pipeline_mode<synchronous>, transform_indices = @transform_0, window_bounds = array<i64: 16, 32>}, {pipeline_mode = #tpu.pipeline_mode<synchronous>, transform_indices = @transform_1, window_bounds = array<i64: 32, 32>}, {pipeline_mode = #tpu.pipeline_mode<synchronous>, transform_indices = @transform_2, window_bounds = array<i64: 1, 32>}, {pipeline_mode = #tpu.pipeline_mode<synchronous>, transform_indices = @transform_3, window_bounds = array<i64: 32, 16>}, {pipeline_mode = #tpu.pipeline_mode<synchronous>, transform_indices = @transform_4, window_bounds = array<i64: 1, 16>}, {pipeline_mode = #tpu.pipeline_mode<synchronous>, transform_indices = @transform_5, window_bounds = array<i64: 2, 16>}]} {
    %c0 = arith.constant 0 : index
    %c0_0 = arith.constant 0 : index
    %0 = vector.load %arg1[%c0, %c0_0] : memref<16x32xf32, #tpu.memory_space<vmem>>, vector<16x32xf32>
    %1 = vector.extract_strided_slice %0 {offsets = [0, 0], sizes = [1, 32], strides = [1, 1]} : vector<16x32xf32> to vector<1x32xf32>
    %2 = vector.extract_strided_slice %0 {offsets = [8, 0], sizes = [1, 32], strides = [1, 1]} : vector<16x32xf32> to vector<1x32xf32>
    %3 = tpu.concatenate %1, %2 in 0 : vector<1x32xf32>, vector<1x32xf32> -> vector<2x32xf32>
    %c0_1 = arith.constant 0 : index
    %c0_2 = arith.constant 0 : index
    %4 = vector.load %arg2[%c0_1, %c0_2] : memref<32x32xf32, #tpu.memory_space<vmem>>, vector<32x32xf32>
    %cst = arith.constant dense<0.000000e+00> : vector<2x32xf32>
    %5 = tpu.matmul %3, %4, %cst {dimension_numbers = #tpu.dot_dimension_numbers<[1], [0], [0], [1], [0, 0, 1, 1], [], []>} : vector<2x32xf32>, vector<32x32xf32>, vector<2x32xf32> -> vector<2x32xf32>
    %c0_3 = arith.constant 0 : index
    %c0_4 = arith.constant 0 : index
    %6 = vector.load %arg3[%c0_3, %c0_4] : memref<1x32xf32, #tpu.memory_space<vmem>>, vector<1x32xf32>
    %7 = vector.broadcast %6 : vector<1x32xf32> to vector<2x32xf32>
    %8 = arith.addf %5, %7 : vector<2x32xf32>
    %9 = math.tanh %8 : vector<2x32xf32>
    %c0_5 = arith.constant 0 : index
    %c0_6 = arith.constant 0 : index
    %10 = vector.load %arg4[%c0_5, %c0_6] : memref<32x16xf32, #tpu.memory_space<vmem>>, vector<32x16xf32>
    %cst_7 = arith.constant dense<0.000000e+00> : vector<2x16xf32>
    %11 = tpu.matmul %9, %10, %cst_7 {dimension_numbers = #tpu.dot_dimension_numbers<[1], [0], [0], [1], [0, 0, 1, 1], [], []>} : vector<2x32xf32>, vector<32x16xf32>, vector<2x16xf32> -> vector<2x16xf32>
    %c0_8 = arith.constant 0 : index
    %c0_9 = arith.constant 0 : index
    %12 = vector.load %arg5[%c0_8, %c0_9] : memref<1x16xf32, #tpu.memory_space<vmem>>, vector<1x16xf32>
    %13 = vector.broadcast %12 : vector<1x16xf32> to vector<2x16xf32>
    %14 = arith.addf %11, %13 : vector<2x16xf32>
    %c0_10 = arith.constant 0 : index
    %c0_11 = arith.constant 0 : index
    %15 = vector.load %arg6[%c0_10, %c0_11] : memref<2x16xf32, #tpu.memory_space<vmem>>, vector<2x16xf32>
    tpu.vector_store %arg6[%c0_10, %c0_11], %14 {strides = array<i32>} : memref<2x16xf32, #tpu.memory_space<vmem>>, vector<2x16xf32>,
    return
  }
  func.func @transform_0(%arg0: i32) -> (i32, i32) {
    %c0_i32 = arith.constant 0 : i32
    %c0_i32_0 = arith.constant 0 : i32
    %c0_i32_1 = arith.constant 0 : i32
    return %c0_i32, %c0_i32_0 : i32, i32
  }
  func.func @transform_1(%arg0: i32) -> (i32, i32) {
    %c0_i32 = arith.constant 0 : i32
    %c0_i32_0 = arith.constant 0 : i32
    %c0_i32_1 = arith.constant 0 : i32
    return %c0_i32, %c0_i32_0 : i32, i32
  }
  func.func @transform_2(%arg0: i32) -> (i32, i32) {
    %c0_i32 = arith.constant 0 : i32
    %c0_i32_0 = arith.constant 0 : i32
    %c0_i32_1 = arith.constant 0 : i32
    return %c0_i32, %c0_i32_0 : i32, i32
  }
  func.func @transform_3(%arg0: i32) -> (i32, i32) {
    %c0_i32 = arith.constant 0 : i32
    %c0_i32_0 = arith.constant 0 : i32
    %c0_i32_1 = arith.constant 0 : i32
    return %c0_i32, %c0_i32_0 : i32, i32
  }
  func.func @transform_4(%arg0: i32) -> (i32, i32) {
    %c0_i32 = arith.constant 0 : i32
    %c0_i32_0 = arith.constant 0 : i32
    %c0_i32_1 = arith.constant 0 : i32
    return %c0_i32, %c0_i32_0 : i32, i32
  }
  func.func @transform_5(%arg0: i32) -> (i32, i32) {
    %c0_i32 = arith.constant 0 : i32
    %c0_i32_0 = arith.constant 0 : i32
    %c0_i32_1 = arith.constant 0 : i32
    return %c0_i32, %c0_i32_0 : i32, i32
  }
}

module attributes {stable_mosaic.version = 11 : i64} {
  func.func @_ln_kernel(%arg0: i32, %arg1: memref<16x32xf32, #tpu.memory_space<vmem>>, %arg2: memref<1x32xf32, #tpu.memory_space<vmem>>, %arg3: memref<1x32xf32, #tpu.memory_space<vmem>>, %arg4: memref<16x32xf32, #tpu.memory_space<vmem>>) attributes {dimension_semantics = [#tpu.dimension_semantics<arbitrary>], iteration_bounds = array<i64: 1>, scalar_prefetch = 0 : i64, scratch_operands = 0 : i64, tpu.core_type = #tpu.core_type<tc>, window_params = [{pipeline_mode = #tpu.pipeline_mode<synchronous>, transform_indices = @transform_0, window_bounds = array<i64: 16, 32>}, {pipeline_mode = #tpu.pipeline_mode<synchronous>, transform_indices = @transform_1, window_bounds = array<i64: 1, 32>}, {pipeline_mode = #tpu.pipeline_mode<synchronous>, transform_indices = @transform_2, window_bounds = array<i64: 1, 32>}, {pipeline_mode = #tpu.pipeline_mode<synchronous>, transform_indices = @transform_3, window_bounds = array<i64: 16, 32>}]} {
    %c0 = arith.constant 0 : index
    %c0_0 = arith.constant 0 : index
    %0 = vector.load %arg1[%c0, %c0_0] : memref<16x32xf32, #tpu.memory_space<vmem>>, vector<16x32xf32>
    %c0_1 = arith.constant 0 : index
    %c0_2 = arith.constant 0 : index
    %1 = vector.load %arg2[%c0_1, %c0_2] : memref<1x32xf32, #tpu.memory_space<vmem>>, vector<1x32xf32>
    %c0_3 = arith.constant 0 : index
    %c0_4 = arith.constant 0 : index
    %2 = vector.load %arg3[%c0_3, %c0_4] : memref<1x32xf32, #tpu.memory_space<vmem>>, vector<1x32xf32>
    %cst = arith.constant dense<0.000000e+00> : vector<16xf32>
    %3 = vector.multi_reduction <add>, %0, %cst [1] : vector<16x32xf32> to vector<16xf32>
    %4 = vector.shape_cast %3 : vector<16xf32> to vector<16x1xf32>
    %cst_5 = arith.constant 3.200000e+01 : f32
    %5 = vector.broadcast %cst_5 : f32 to vector<16x1xf32>
    %6 = arith.divf %4, %5 : vector<16x1xf32>
    %7 = vector.broadcast %6 : vector<16x1xf32> to vector<16x32xf32>
    %8 = arith.subf %0, %7 : vector<16x32xf32>
    %9 = arith.mulf %8, %8 : vector<16x32xf32>
    %cst_6 = arith.constant dense<0.000000e+00> : vector<16xf32>
    %10 = vector.multi_reduction <add>, %9, %cst_6 [1] : vector<16x32xf32> to vector<16xf32>
    %11 = vector.shape_cast %10 : vector<16xf32> to vector<16x1xf32>
    %cst_7 = arith.constant 3.200000e+01 : f32
    %12 = vector.broadcast %cst_7 : f32 to vector<16x1xf32>
    %13 = arith.divf %11, %12 : vector<16x1xf32>
    %cst_8 = arith.constant 9.99999996E-13 : f32
    %14 = vector.broadcast %cst_8 : f32 to vector<16x1xf32>
    %15 = arith.addf %13, %14 : vector<16x1xf32>
    %16 = math.rsqrt %15 : vector<16x1xf32>
    %17 = vector.broadcast %16 : vector<16x1xf32> to vector<16x32xf32>
    %18 = arith.mulf %8, %17 : vector<16x32xf32>
    %19 = vector.broadcast %1 : vector<1x32xf32> to vector<16x32xf32>
    %20 = arith.mulf %18, %19 : vector<16x32xf32>
    %21 = vector.broadcast %2 : vector<1x32xf32> to vector<16x32xf32>
    %22 = arith.addf %20, %21 : vector<16x32xf32>
    %c0_9 = arith.constant 0 : index
    %c0_10 = arith.constant 0 : index
    %23 = vector.load %arg4[%c0_9, %c0_10] : memref<16x32xf32, #tpu.memory_space<vmem>>, vector<16x32xf32>
    tpu.vector_store %arg4[%c0_9, %c0_10], %22 {strides = array<i32>} : memref<16x32xf32, #tpu.memory_space<vmem>>, vector<16x32xf32>,
    return
  }
  func.func @transform_0(%arg0: i32) -> (i32, i32) {
    %c0_i32 = arith.constant 0 : i32
    %c0_i32_0 = arith.constant 0 : i32
    %c0_i32_1 = arith.constant 0 : i32
    return %c0_i32, %c0_i32_0 : i32, i32
  }
  func.func @transform_1(%arg0: i32) -> (i32, i32) {
    %c0_i32 = arith.constant 0 : i32
    %c0_i32_0 = arith.constant 0 : i32
    %c0_i32_1 = arith.constant 0 : i32
    return %c0_i32, %c0_i32_0 : i32, i32
  }
  func.func @transform_2(%arg0: i32) -> (i32, i32) {
    %c0_i32 = arith.constant 0 : i32
    %c0_i32_0 = arith.constant 0 : i32
    %c0_i32_1 = arith.constant 0 : i32
    return %c0_i32, %c0_i32_0 : i32, i32
  }
  func.func @transform_3(%arg0: i32) -> (i32, i32) {
    %c0_i32 = arith.constant 0 : i32
    %c0_i32_0 = arith.constant 0 : i32
    %c0_i32_1 = arith.constant 0 : i32
    return %c0_i32, %c0_i32_0 : i32, i32
  }
}

module attributes {stable_mosaic.version = 11 : i64} {
  func.func @_encoder_layer_kernel(%arg0: i32, %arg1: memref<16x32xf32, #tpu.memory_space<vmem>>, %arg2: memref<2x8xf32, #tpu.memory_space<vmem>>, %arg3: memref<32x96xf32, #tpu.memory_space<vmem>>, %arg4: memref<1x96xf32, #tpu.memory_space<vmem>>, %arg5: memref<32x32xf32, #tpu.memory_space<vmem>>, %arg6: memref<1x32xf32, #tpu.memory_space<vmem>>, %arg7: memref<1x32xf32, #tpu.memory_space<vmem>>, %arg8: memref<1x32xf32, #tpu.memory_space<vmem>>, %arg9: memref<32x64xf32, #tpu.memory_space<vmem>>, %arg10: memref<1x64xf32, #tpu.memory_space<vmem>>, %arg11: memref<64x32xf32, #tpu.memory_space<vmem>>, %arg12: memref<1x32xf32, #tpu.memory_space<vmem>>, %arg13: memref<1x32xf32, #tpu.memory_space<vmem>>, %arg14: memref<1x32xf32, #tpu.memory_space<vmem>>, %arg15: memref<16x32xf32, #tpu.memory_space<vmem>>) attributes {dimension_semantics = [#tpu.dimension_semantics<arbitrary>], iteration_bounds = array<i64: 1>, scalar_prefetch = 0 : i64, scratch_operands = 0 : i64, tpu.core_type = #tpu.core_type<tc>, window_params = [{pipeline_mode = #tpu.pipeline_mode<synchronous>, transform_indices = @transform_0, window_bounds = array<i64: 16, 32>}, {pipeline_mode = #tpu.pipeline_mode<synchronous>, transform_indices = @transform_1, window_bounds = array<i64: 2, 8>}, {pipeline_mode = #tpu.pipeline_mode<synchronous>, transform_indices = @transform_2, window_bounds = array<i64: 32, 96>}, {pipeline_mode = #tpu.pipeline_mode<synchronous>, transform_indices = @transform_3, window_bounds = array<i64: 1, 96>}, {pipeline_mode = #tpu.pipeline_mode<synchronous>, transform_indices = @transform_4, window_bounds = array<i64: 32, 32>}, {pipeline_mode = #tpu.pipeline_mode<synchronous>, transform_indices = @transform_5, window_bounds = array<i64: 1, 32>}, {pipeline_mode = #tpu.pipeline_mode<synchronous>, transform_indices = @transform_6, window_bounds = array<i64: 1, 32>}, {pipeline_mode = #tpu.pipeline_mode<synchronous>, transform_indices = @transform_7, window_bounds = array<i64: 1, 32>}, {pipeline_mode = #tpu.pipeline_mode<synchronous>, transform_indices = @transform_8, window_bounds = array<i64: 32, 64>}, {pipeline_mode = #tpu.pipeline_mode<synchronous>, transform_indices = @transform_9, window_bounds = array<i64: 1, 64>}, {pipeline_mode = #tpu.pipeline_mode<synchronous>, transform_indices = @transform_10, window_bounds = array<i64: 64, 32>}, {pipeline_mode = #tpu.pipeline_mode<synchronous>, transform_indices = @transform_11, window_bounds = array<i64: 1, 32>}, {pipeline_mode = #tpu.pipeline_mode<synchronous>, transform_indices = @transform_12, window_bounds = array<i64: 1, 32>}, {pipeline_mode = #tpu.pipeline_mode<synchronous>, transform_indices = @transform_13, window_bounds = array<i64: 1, 32>}, {pipeline_mode = #tpu.pipeline_mode<synchronous>, transform_indices = @transform_14, window_bounds = array<i64: 16, 32>}]} {
    %c0 = arith.constant 0 : index
    %c0_0 = arith.constant 0 : index
    %0 = vector.load %arg1[%c0, %c0_0] : memref<16x32xf32, #tpu.memory_space<vmem>>, vector<16x32xf32>
    %c0_1 = arith.constant 0 : index
    %c0_2 = arith.constant 0 : index
    %1 = vector.load %arg3[%c0_1, %c0_2] : memref<32x96xf32, #tpu.memory_space<vmem>>, vector<32x96xf32>
    %cst = arith.constant dense<0.000000e+00> : vector<16x96xf32>
    %2 = tpu.matmul %0, %1, %cst {dimension_numbers = #tpu.dot_dimension_numbers<[1], [0], [0], [1], [0, 0, 1, 1], [], []>} : vector<16x32xf32>, vector<32x96xf32>, vector<16x96xf32> -> vector<16x96xf32>
    %c0_3 = arith.constant 0 : index
    %c0_4 = arith.constant 0 : index
    %3 = vector.load %arg4[%c0_3, %c0_4] : memref<1x96xf32, #tpu.memory_space<vmem>>, vector<1x96xf32>
    %4 = vector.broadcast %3 : vector<1x96xf32> to vector<16x96xf32>
    %5 = arith.addf %2, %4 : vector<16x96xf32>
    %6 = vector.extract_strided_slice %5 {offsets = [0, 0], sizes = [16, 32], strides = [1, 1]} : vector<16x96xf32> to vector<16x32xf32>
    %7 = vector.extract_strided_slice %5 {offsets = [0, 32], sizes = [16, 32], strides = [1, 1]} : vector<16x96xf32> to vector<16x32xf32>
    %8 = vector.extract_strided_slice %5 {offsets = [0, 64], sizes = [16, 32], strides = [1, 1]} : vector<16x96xf32> to vector<16x32xf32>
    %c0_5 = arith.constant 0 : index
    %c0_6 = arith.constant 0 : index
    %9 = vector.load %arg2[%c0_5, %c0_6] : memref<2x8xf32, #tpu.memory_space<vmem>>, vector<2x8xf32>
    %10 = vector.extract_strided_slice %6 {offsets = [0, 0], sizes = [8, 32], strides = [1, 1]} : vector<16x32xf32> to vector<8x32xf32>
    %11 = vector.extract_strided_slice %7 {offsets = [0, 0], sizes = [8, 32], strides = [1, 1]} : vector<16x32xf32> to vector<8x32xf32>
    %12 = vector.extract_strided_slice %8 {offsets = [0, 0], sizes = [8, 32], strides = [1, 1]} : vector<16x32xf32> to vector<8x32xf32>
    %13 = vector.extract_strided_slice %9 {offsets = [0, 0], sizes = [1, 8], strides = [1, 1]} : vector<2x8xf32> to vector<1x8xf32>
    %14 = vector.extract_strided_slice %10 {offsets = [0, 0], sizes = [8, 8], strides = [1, 1]} : vector<8x32xf32> to vector<8x8xf32>
    %15 = vector.extract_strided_slice %11 {offsets = [0, 0], sizes = [8, 8], strides = [1, 1]} : vector<8x32xf32> to vector<8x8xf32>
    %16 = vector.extract_strided_slice %12 {offsets = [0, 0], sizes = [8, 8], strides = [1, 1]} : vector<8x32xf32> to vector<8x8xf32>
    %cst_7 = arith.constant dense<0.000000e+00> : vector<8x8xf32>
    %17 = tpu.matmul %14, %15, %cst_7 {dimension_numbers = #tpu.dot_dimension_numbers<[1], [1], [0], [0], [0, 0, 1, 0], [], []>} : vector<8x8xf32>, vector<8x8xf32>, vector<8x8xf32> -> vector<8x8xf32>
    %cst_8 = arith.constant 0.353553385 : f32
    %18 = vector.broadcast %cst_8 : f32 to vector<8x8xf32>
    %19 = arith.mulf %17, %18 : vector<8x8xf32>
    %20 = vector.broadcast %13 : vector<1x8xf32> to vector<8x8xf32>
    %21 = arith.addf %19, %20 : vector<8x8xf32>
    %cst_9 = arith.constant dense<0xFF800000> : vector<8xf32>
    %22 = vector.multi_reduction <maximumf>, %21, %cst_9 [1] : vector<8x8xf32> to vector<8xf32>
    %23 = vector.shape_cast %22 : vector<8xf32> to vector<8x1xf32>
    %24 = vector.broadcast %23 : vector<8x1xf32> to vector<8x8xf32>
    %25 = arith.subf %21, %24 : vector<8x8xf32>
    %26 = math.exp %25 : vector<8x8xf32>
    %cst_10 = arith.constant dense<0.000000e+00> : vector<8xf32>
    %27 = vector.multi_reduction <add>, %26, %cst_10 [1] : vector<8x8xf32> to vector<8xf32>
    %28 = vector.shape_cast %27 : vector<8xf32> to vector<8x1xf32>
    %29 = tpu.reciprocal %28 {approx = true} : vector<8x1xf32> -> vector<8x1xf32>
    %30 = vector.broadcast %29 : vector<8x1xf32> to vector<8x8xf32>
    %31 = arith.mulf %26, %30 : vector<8x8xf32>
    %cst_11 = arith.constant dense<0.000000e+00> : vector<8x8xf32>
    %32 = tpu.matmul %31, %16, %cst_11 {dimension_numbers = #tpu.dot_dimension_numbers<[1], [0], [0], [1], [0, 0, 1, 1], [], []>} : vector<8x8xf32>, vector<8x8xf32>, vector<8x8xf32> -> vector<8x8xf32>
    %33 = vector.extract_strided_slice %10 {offsets = [0, 8], sizes = [8, 8], strides = [1, 1]} : vector<8x32xf32> to vector<8x8xf32>
    %34 = vector.extract_strided_slice %11 {offsets = [0, 8], sizes = [8, 8], strides = [1, 1]} : vector<8x32xf32> to vector<8x8xf32>
    %35 = vector.extract_strided_slice %12 {offsets = [0, 8], sizes = [8, 8], strides = [1, 1]} : vector<8x32xf32> to vector<8x8xf32>
    %cst_12 = arith.constant dense<0.000000e+00> : vector<8x8xf32>
    %36 = tpu.matmul %33, %34, %cst_12 {dimension_numbers = #tpu.dot_dimension_numbers<[1], [1], [0], [0], [0, 0, 1, 0], [], []>} : vector<8x8xf32>, vector<8x8xf32>, vector<8x8xf32> -> vector<8x8xf32>
    %cst_13 = arith.constant 0.353553385 : f32
    %37 = vector.broadcast %cst_13 : f32 to vector<8x8xf32>
    %38 = arith.mulf %36, %37 : vector<8x8xf32>
    %39 = vector.broadcast %13 : vector<1x8xf32> to vector<8x8xf32>
    %40 = arith.addf %38, %39 : vector<8x8xf32>
    %cst_14 = arith.constant dense<0xFF800000> : vector<8xf32>
    %41 = vector.multi_reduction <maximumf>, %40, %cst_14 [1] : vector<8x8xf32> to vector<8xf32>
    %42 = vector.shape_cast %41 : vector<8xf32> to vector<8x1xf32>
    %43 = vector.broadcast %42 : vector<8x1xf32> to vector<8x8xf32>
    %44 = arith.subf %40, %43 : vector<8x8xf32>
    %45 = math.exp %44 : vector<8x8xf32>
    %cst_15 = arith.constant dense<0.000000e+00> : vector<8xf32>
    %46 = vector.multi_reduction <add>, %45, %cst_15 [1] : vector<8x8xf32> to vector<8xf32>
    %47 = vector.shape_cast %46 : vector<8xf32> to vector<8x1xf32>
    %48 = tpu.reciprocal %47 {approx = true} : vector<8x1xf32> -> vector<8x1xf32>
    %49 = vector.broadcast %48 : vector<8x1xf32> to vector<8x8xf32>
    %50 = arith.mulf %45, %49 : vector<8x8xf32>
    %cst_16 = arith.constant dense<0.000000e+00> : vector<8x8xf32>
    %51 = tpu.matmul %50, %35, %cst_16 {dimension_numbers = #tpu.dot_dimension_numbers<[1], [0], [0], [1], [0, 0, 1, 1], [], []>} : vector<8x8xf32>, vector<8x8xf32>, vector<8x8xf32> -> vector<8x8xf32>
    %52 = vector.extract_strided_slice %10 {offsets = [0, 16], sizes = [8, 8], strides = [1, 1]} : vector<8x32xf32> to vector<8x8xf32>
    %53 = vector.extract_strided_slice %11 {offsets = [0, 16], sizes = [8, 8], strides = [1, 1]} : vector<8x32xf32> to vector<8x8xf32>
    %54 = vector.extract_strided_slice %12 {offsets = [0, 16], sizes = [8, 8], strides = [1, 1]} : vector<8x32xf32> to vector<8x8xf32>
    %cst_17 = arith.constant dense<0.000000e+00> : vector<8x8xf32>
    %55 = tpu.matmul %52, %53, %cst_17 {dimension_numbers = #tpu.dot_dimension_numbers<[1], [1], [0], [0], [0, 0, 1, 0], [], []>} : vector<8x8xf32>, vector<8x8xf32>, vector<8x8xf32> -> vector<8x8xf32>
    %cst_18 = arith.constant 0.353553385 : f32
    %56 = vector.broadcast %cst_18 : f32 to vector<8x8xf32>
    %57 = arith.mulf %55, %56 : vector<8x8xf32>
    %58 = vector.broadcast %13 : vector<1x8xf32> to vector<8x8xf32>
    %59 = arith.addf %57, %58 : vector<8x8xf32>
    %cst_19 = arith.constant dense<0xFF800000> : vector<8xf32>
    %60 = vector.multi_reduction <maximumf>, %59, %cst_19 [1] : vector<8x8xf32> to vector<8xf32>
    %61 = vector.shape_cast %60 : vector<8xf32> to vector<8x1xf32>
    %62 = vector.broadcast %61 : vector<8x1xf32> to vector<8x8xf32>
    %63 = arith.subf %59, %62 : vector<8x8xf32>
    %64 = math.exp %63 : vector<8x8xf32>
    %cst_20 = arith.constant dense<0.000000e+00> : vector<8xf32>
    %65 = vector.multi_reduction <add>, %64, %cst_20 [1] : vector<8x8xf32> to vector<8xf32>
    %66 = vector.shape_cast %65 : vector<8xf32> to vector<8x1xf32>
    %67 = tpu.reciprocal %66 {approx = true} : vector<8x1xf32> -> vector<8x1xf32>
    %68 = vector.broadcast %67 : vector<8x1xf32> to vector<8x8xf32>
    %69 = arith.mulf %64, %68 : vector<8x8xf32>
    %cst_21 = arith.constant dense<0.000000e+00> : vector<8x8xf32>
    %70 = tpu.matmul %69, %54, %cst_21 {dimension_numbers = #tpu.dot_dimension_numbers<[1], [0], [0], [1], [0, 0, 1, 1], [], []>} : vector<8x8xf32>, vector<8x8xf32>, vector<8x8xf32> -> vector<8x8xf32>
    %71 = vector.extract_strided_slice %10 {offsets = [0, 24], sizes = [8, 8], strides = [1, 1]} : vector<8x32xf32> to vector<8x8xf32>
    %72 = vector.extract_strided_slice %11 {offsets = [0, 24], sizes = [8, 8], strides = [1, 1]} : vector<8x32xf32> to vector<8x8xf32>
    %73 = vector.extract_strided_slice %12 {offsets = [0, 24], sizes = [8, 8], strides = [1, 1]} : vector<8x32xf32> to vector<8x8xf32>
    %cst_22 = arith.constant dense<0.000000e+00> : vector<8x8xf32>
    %74 = tpu.matmul %71, %72, %cst_22 {dimension_numbers = #tpu.dot_dimension_numbers<[1], [1], [0], [0], [0, 0, 1, 0], [], []>} : vector<8x8xf32>, vector<8x8xf32>, vector<8x8xf32> -> vector<8x8xf32>
    %cst_23 = arith.constant 0.353553385 : f32
    %75 = vector.broadcast %cst_23 : f32 to vector<8x8xf32>
    %76 = arith.mulf %74, %75 : vector<8x8xf32>
    %77 = vector.broadcast %13 : vector<1x8xf32> to vector<8x8xf32>
    %78 = arith.addf %76, %77 : vector<8x8xf32>
    %cst_24 = arith.constant dense<0xFF800000> : vector<8xf32>
    %79 = vector.multi_reduction <maximumf>, %78, %cst_24 [1] : vector<8x8xf32> to vector<8xf32>
    %80 = vector.shape_cast %79 : vector<8xf32> to vector<8x1xf32>
    %81 = vector.broadcast %80 : vector<8x1xf32> to vector<8x8xf32>
    %82 = arith.subf %78, %81 : vector<8x8xf32>
    %83 = math.exp %82 : vector<8x8xf32>
    %cst_25 = arith.constant dense<0.000000e+00> : vector<8xf32>
    %84 = vector.multi_reduction <add>, %83, %cst_25 [1] : vector<8x8xf32> to vector<8xf32>
    %85 = vector.shape_cast %84 : vector<8xf32> to vector<8x1xf32>
    %86 = tpu.reciprocal %85 {approx = true} : vector<8x1xf32> -> vector<8x1xf32>
    %87 = vector.broadcast %86 : vector<8x1xf32> to vector<8x8xf32>
    %88 = arith.mulf %83, %87 : vector<8x8xf32>
    %cst_26 = arith.constant dense<0.000000e+00> : vector<8x8xf32>
    %89 = tpu.matmul %88, %73, %cst_26 {dimension_numbers = #tpu.dot_dimension_numbers<[1], [0], [0], [1], [0, 0, 1, 1], [], []>} : vector<8x8xf32>, vector<8x8xf32>, vector<8x8xf32> -> vector<8x8xf32>
    %90 = tpu.concatenate %32, %51, %70, %89 in 1 : vector<8x8xf32>, vector<8x8xf32>, vector<8x8xf32>, vector<8x8xf32> -> vector<8x32xf32>
    %91 = vector.extract_strided_slice %6 {offsets = [8, 0], sizes = [8, 32], strides = [1, 1]} : vector<16x32xf32> to vector<8x32xf32>
    %92 = vector.extract_strided_slice %7 {offsets = [8, 0], sizes = [8, 32], strides = [1, 1]} : vector<16x32xf32> to vector<8x32xf32>
    %93 = vector.extract_strided_slice %8 {offsets = [8, 0], sizes = [8, 32], strides = [1, 1]} : vector<16x32xf32> to vector<8x32xf32>
    %94 = vector.extract_strided_slice %9 {offsets = [1, 0], sizes = [1, 8], strides = [1, 1]} : vector<2x8xf32> to vector<1x8xf32>
    %95 = vector.extract_strided_slice %91 {offsets = [0, 0], sizes = [8, 8], strides = [1, 1]} : vector<8x32xf32> to vector<8x8xf32>
    %96 = vector.extract_strided_slice %92 {offsets = [0, 0], sizes = [8, 8], strides = [1, 1]} : vector<8x32xf32> to vector<8x8xf32>
    %97 = vector.extract_strided_slice %93 {offsets = [0, 0], sizes = [8, 8], strides = [1, 1]} : vector<8x32xf32> to vector<8x8xf32>
    %cst_27 = arith.constant dense<0.000000e+00> : vector<8x8xf32>
    %98 = tpu.matmul %95, %96, %cst_27 {dimension_numbers = #tpu.dot_dimension_numbers<[1], [1], [0], [0], [0, 0, 1, 0], [], []>} : vector<8x8xf32>, vector<8x8xf32>, vector<8x8xf32> -> vector<8x8xf32>
    %cst_28 = arith.constant 0.353553385 : f32
    %99 = vector.broadcast %cst_28 : f32 to vector<8x8xf32>
    %100 = arith.mulf %98, %99 : vector<8x8xf32>
    %101 = vector.broadcast %94 : vector<1x8xf32> to vector<8x8xf32>
    %102 = arith.addf %100, %101 : vector<8x8xf32>
    %cst_29 = arith.constant dense<0xFF800000> : vector<8xf32>
    %103 = vector.multi_reduction <maximumf>, %102, %cst_29 [1] : vector<8x8xf32> to vector<8xf32>
    %104 = vector.shape_cast %103 : vector<8xf32> to vector<8x1xf32>
    %105 = vector.broadcast %104 : vector<8x1xf32> to vector<8x8xf32>
    %106 = arith.subf %102, %105 : vector<8x8xf32>
    %107 = math.exp %106 : vector<8x8xf32>
    %cst_30 = arith.constant dense<0.000000e+00> : vector<8xf32>
    %108 = vector.multi_reduction <add>, %107, %cst_30 [1] : vector<8x8xf32> to vector<8xf32>
    %109 = vector.shape_cast %108 : vector<8xf32> to vector<8x1xf32>
    %110 = tpu.reciprocal %109 {approx = true} : vector<8x1xf32> -> vector<8x1xf32>
    %111 = vector.broadcast %110 : vector<8x1xf32> to vector<8x8xf32>
    %112 = arith.mulf %107, %111 : vector<8x8xf32>
    %cst_31 = arith.constant dense<0.000000e+00> : vector<8x8xf32>
    %113 = tpu.matmul %112, %97, %cst_31 {dimension_numbers = #tpu.dot_dimension_numbers<[1], [0], [0], [1], [0, 0, 1, 1], [], []>} : vector<8x8xf32>, vector<8x8xf32>, vector<8x8xf32> -> vector<8x8xf32>
    %114 = vector.extract_strided_slice %91 {offsets = [0, 8], sizes = [8, 8], strides = [1, 1]} : vector<8x32xf32> to vector<8x8xf32>
    %115 = vector.extract_strided_slice %92 {offsets = [0, 8], sizes = [8, 8], strides = [1, 1]} : vector<8x32xf32> to vector<8x8xf32>
    %116 = vector.extract_strided_slice %93 {offsets = [0, 8], sizes = [8, 8], strides = [1, 1]} : vector<8x32xf32> to vector<8x8xf32>
    %cst_32 = arith.constant dense<0.000000e+00> : vector<8x8xf32>
    %117 = tpu.matmul %114, %115, %cst_32 {dimension_numbers = #tpu.dot_dimension_numbers<[1], [1], [0], [0], [0, 0, 1, 0], [], []>} : vector<8x8xf32>, vector<8x8xf32>, vector<8x8xf32> -> vector<8x8xf32>
    %cst_33 = arith.constant 0.353553385 : f32
    %118 = vector.broadcast %cst_33 : f32 to vector<8x8xf32>
    %119 = arith.mulf %117, %118 : vector<8x8xf32>
    %120 = vector.broadcast %94 : vector<1x8xf32> to vector<8x8xf32>
    %121 = arith.addf %119, %120 : vector<8x8xf32>
    %cst_34 = arith.constant dense<0xFF800000> : vector<8xf32>
    %122 = vector.multi_reduction <maximumf>, %121, %cst_34 [1] : vector<8x8xf32> to vector<8xf32>
    %123 = vector.shape_cast %122 : vector<8xf32> to vector<8x1xf32>
    %124 = vector.broadcast %123 : vector<8x1xf32> to vector<8x8xf32>
    %125 = arith.subf %121, %124 : vector<8x8xf32>
    %126 = math.exp %125 : vector<8x8xf32>
    %cst_35 = arith.constant dense<0.000000e+00> : vector<8xf32>
    %127 = vector.multi_reduction <add>, %126, %cst_35 [1] : vector<8x8xf32> to vector<8xf32>
    %128 = vector.shape_cast %127 : vector<8xf32> to vector<8x1xf32>
    %129 = tpu.reciprocal %128 {approx = true} : vector<8x1xf32> -> vector<8x1xf32>
    %130 = vector.broadcast %129 : vector<8x1xf32> to vector<8x8xf32>
    %131 = arith.mulf %126, %130 : vector<8x8xf32>
    %cst_36 = arith.constant dense<0.000000e+00> : vector<8x8xf32>
    %132 = tpu.matmul %131, %116, %cst_36 {dimension_numbers = #tpu.dot_dimension_numbers<[1], [0], [0], [1], [0, 0, 1, 1], [], []>} : vector<8x8xf32>, vector<8x8xf32>, vector<8x8xf32> -> vector<8x8xf32>
    %133 = vector.extract_strided_slice %91 {offsets = [0, 16], sizes = [8, 8], strides = [1, 1]} : vector<8x32xf32> to vector<8x8xf32>
    %134 = vector.extract_strided_slice %92 {offsets = [0, 16], sizes = [8, 8], strides = [1, 1]} : vector<8x32xf32> to vector<8x8xf32>
    %135 = vector.extract_strided_slice %93 {offsets = [0, 16], sizes = [8, 8], strides = [1, 1]} : vector<8x32xf32> to vector<8x8xf32>
    %cst_37 = arith.constant dense<0.000000e+00> : vector<8x8xf32>
    %136 = tpu.matmul %133, %134, %cst_37 {dimension_numbers = #tpu.dot_dimension_numbers<[1], [1], [0], [0], [0, 0, 1, 0], [], []>} : vector<8x8xf32>, vector<8x8xf32>, vector<8x8xf32> -> vector<8x8xf32>
    %cst_38 = arith.constant 0.353553385 : f32
    %137 = vector.broadcast %cst_38 : f32 to vector<8x8xf32>
    %138 = arith.mulf %136, %137 : vector<8x8xf32>
    %139 = vector.broadcast %94 : vector<1x8xf32> to vector<8x8xf32>
    %140 = arith.addf %138, %139 : vector<8x8xf32>
    %cst_39 = arith.constant dense<0xFF800000> : vector<8xf32>
    %141 = vector.multi_reduction <maximumf>, %140, %cst_39 [1] : vector<8x8xf32> to vector<8xf32>
    %142 = vector.shape_cast %141 : vector<8xf32> to vector<8x1xf32>
    %143 = vector.broadcast %142 : vector<8x1xf32> to vector<8x8xf32>
    %144 = arith.subf %140, %143 : vector<8x8xf32>
    %145 = math.exp %144 : vector<8x8xf32>
    %cst_40 = arith.constant dense<0.000000e+00> : vector<8xf32>
    %146 = vector.multi_reduction <add>, %145, %cst_40 [1] : vector<8x8xf32> to vector<8xf32>
    %147 = vector.shape_cast %146 : vector<8xf32> to vector<8x1xf32>
    %148 = tpu.reciprocal %147 {approx = true} : vector<8x1xf32> -> vector<8x1xf32>
    %149 = vector.broadcast %148 : vector<8x1xf32> to vector<8x8xf32>
    %150 = arith.mulf %145, %149 : vector<8x8xf32>
    %cst_41 = arith.constant dense<0.000000e+00> : vector<8x8xf32>
    %151 = tpu.matmul %150, %135, %cst_41 {dimension_numbers = #tpu.dot_dimension_numbers<[1], [0], [0], [1], [0, 0, 1, 1], [], []>} : vector<8x8xf32>, vector<8x8xf32>, vector<8x8xf32> -> vector<8x8xf32>
    %152 = vector.extract_strided_slice %91 {offsets = [0, 24], sizes = [8, 8], strides = [1, 1]} : vector<8x32xf32> to vector<8x8xf32>
    %153 = vector.extract_strided_slice %92 {offsets = [0, 24], sizes = [8, 8], strides = [1, 1]} : vector<8x32xf32> to vector<8x8xf32>
    %154 = vector.extract_strided_slice %93 {offsets = [0, 24], sizes = [8, 8], strides = [1, 1]} : vector<8x32xf32> to vector<8x8xf32>
    %cst_42 = arith.constant dense<0.000000e+00> : vector<8x8xf32>
    %155 = tpu.matmul %152, %153, %cst_42 {dimension_numbers = #tpu.dot_dimension_numbers<[1], [1], [0], [0], [0, 0, 1, 0], [], []>} : vector<8x8xf32>, vector<8x8xf32>, vector<8x8xf32> -> vector<8x8xf32>
    %cst_43 = arith.constant 0.353553385 : f32
    %156 = vector.broadcast %cst_43 : f32 to vector<8x8xf32>
    %157 = arith.mulf %155, %156 : vector<8x8xf32>
    %158 = vector.broadcast %94 : vector<1x8xf32> to vector<8x8xf32>
    %159 = arith.addf %157, %158 : vector<8x8xf32>
    %cst_44 = arith.constant dense<0xFF800000> : vector<8xf32>
    %160 = vector.multi_reduction <maximumf>, %159, %cst_44 [1] : vector<8x8xf32> to vector<8xf32>
    %161 = vector.shape_cast %160 : vector<8xf32> to vector<8x1xf32>
    %162 = vector.broadcast %161 : vector<8x1xf32> to vector<8x8xf32>
    %163 = arith.subf %159, %162 : vector<8x8xf32>
    %164 = math.exp %163 : vector<8x8xf32>
    %cst_45 = arith.constant dense<0.000000e+00> : vector<8xf32>
    %165 = vector.multi_reduction <add>, %164, %cst_45 [1] : vector<8x8xf32> to vector<8xf32>
    %166 = vector.shape_cast %165 : vector<8xf32> to vector<8x1xf32>
    %167 = tpu.reciprocal %166 {approx = true} : vector<8x1xf32> -> vector<8x1xf32>
    %168 = vector.broadcast %167 : vector<8x1xf32> to vector<8x8xf32>
    %169 = arith.mulf %164, %168 : vector<8x8xf32>
    %cst_46 = arith.constant dense<0.000000e+00> : vector<8x8xf32>
    %170 = tpu.matmul %169, %154, %cst_46 {dimension_numbers = #tpu.dot_dimension_numbers<[1], [0], [0], [1], [0, 0, 1, 1], [], []>} : vector<8x8xf32>, vector<8x8xf32>, vector<8x8xf32> -> vector<8x8xf32>
    %171 = tpu.concatenate %113, %132, %151, %170 in 1 : vector<8x8xf32>, vector<8x8xf32>, vector<8x8xf32>, vector<8x8xf32> -> vector<8x32xf32>
    %172 = tpu.concatenate %90, %171 in 0 : vector<8x32xf32>, vector<8x32xf32> -> vector<16x32xf32>
    %c0_47 = arith.constant 0 : index
    %c0_48 = arith.constant 0 : index
    %173 = vector.load %arg5[%c0_47, %c0_48] : memref<32x32xf32, #tpu.memory_space<vmem>>, vector<32x32xf32>
    %cst_49 = arith.constant dense<0.000000e+00> : vector<16x32xf32>
    %174 = tpu.matmul %172, %173, %cst_49 {dimension_numbers = #tpu.dot_dimension_numbers<[1], [0], [0], [1], [0, 0, 1, 1], [], []>} : vector<16x32xf32>, vector<32x32xf32>, vector<16x32xf32> -> vector<16x32xf32>
    %c0_50 = arith.constant 0 : index
    %c0_51 = arith.constant 0 : index
    %175 = vector.load %arg6[%c0_50, %c0_51] : memref<1x32xf32, #tpu.memory_space<vmem>>, vector<1x32xf32>
    %176 = vector.broadcast %175 : vector<1x32xf32> to vector<16x32xf32>
    %177 = arith.addf %174, %176 : vector<16x32xf32>
    %178 = arith.addf %177, %0 : vector<16x32xf32>
    %c0_52 = arith.constant 0 : index
    %c0_53 = arith.constant 0 : index
    %179 = vector.load %arg7[%c0_52, %c0_53] : memref<1x32xf32, #tpu.memory_space<vmem>>, vector<1x32xf32>
    %c0_54 = arith.constant 0 : index
    %c0_55 = arith.constant 0 : index
    %180 = vector.load %arg8[%c0_54, %c0_55] : memref<1x32xf32, #tpu.memory_space<vmem>>, vector<1x32xf32>
    %cst_56 = arith.constant dense<0.000000e+00> : vector<16xf32>
    %181 = vector.multi_reduction <add>, %178, %cst_56 [1] : vector<16x32xf32> to vector<16xf32>
    %182 = vector.shape_cast %181 : vector<16xf32> to vector<16x1xf32>
    %cst_57 = arith.constant 3.200000e+01 : f32
    %183 = vector.broadcast %cst_57 : f32 to vector<16x1xf32>
    %184 = arith.divf %182, %183 : vector<16x1xf32>
    %185 = vector.broadcast %184 : vector<16x1xf32> to vector<16x32xf32>
    %186 = arith.subf %178, %185 : vector<16x32xf32>
    %187 = arith.mulf %186, %186 : vector<16x32xf32>
    %cst_58 = arith.constant dense<0.000000e+00> : vector<16xf32>
    %188 = vector.multi_reduction <add>, %187, %cst_58 [1] : vector<16x32xf32> to vector<16xf32>
    %189 = vector.shape_cast %188 : vector<16xf32> to vector<16x1xf32>
    %cst_59 = arith.constant 3.200000e+01 : f32
    %190 = vector.broadcast %cst_59 : f32 to vector<16x1xf32>
    %191 = arith.divf %189, %190 : vector<16x1xf32>
    %cst_60 = arith.constant 9.99999996E-13 : f32
    %192 = vector.broadcast %cst_60 : f32 to vector<16x1xf32>
    %193 = arith.addf %191, %192 : vector<16x1xf32>
    %194 = math.rsqrt %193 : vector<16x1xf32>
    %195 = vector.broadcast %194 : vector<16x1xf32> to vector<16x32xf32>
    %196 = arith.mulf %186, %195 : vector<16x32xf32>
    %197 = vector.broadcast %179 : vector<1x32xf32> to vector<16x32xf32>
    %198 = arith.mulf %196, %197 : vector<16x32xf32>
    %199 = vector.broadcast %180 : vector<1x32xf32> to vector<16x32xf32>
    %200 = arith.addf %198, %199 : vector<16x32xf32>
    %c0_61 = arith.constant 0 : index
    %c0_62 = arith.constant 0 : index
    %201 = vector.load %arg9[%c0_61, %c0_62] : memref<32x64xf32, #tpu.memory_space<vmem>>, vector<32x64xf32>
    %cst_63 = arith.constant dense<0.000000e+00> : vector<16x64xf32>
    %202 = tpu.matmul %200, %201, %cst_63 {dimension_numbers = #tpu.dot_dimension_numbers<[1], [0], [0], [1], [0, 0, 1, 1], [], []>} : vector<16x32xf32>, vector<32x64xf32>, vector<16x64xf32> -> vector<16x64xf32>
    %c0_64 = arith.constant 0 : index
    %c0_65 = arith.constant 0 : index
    %203 = vector.load %arg10[%c0_64, %c0_65] : memref<1x64xf32, #tpu.memory_space<vmem>>, vector<1x64xf32>
    %204 = vector.broadcast %203 : vector<1x64xf32> to vector<16x64xf32>
    %205 = arith.addf %202, %204 : vector<16x64xf32>
    %206 = arith.mulf %205, %205 : vector<16x64xf32>
    %207 = arith.mulf %205, %206 : vector<16x64xf32>
    %cst_66 = arith.constant 4.471500e-02 : f32
    %208 = vector.broadcast %cst_66 : f32 to vector<16x64xf32>
    %209 = arith.mulf %208, %207 : vector<16x64xf32>
    %210 = arith.addf %205, %209 : vector<16x64xf32>
    %cst_67 = arith.constant 0.797884583 : f32
    %211 = vector.broadcast %cst_67 : f32 to vector<16x64xf32>
    %212 = arith.mulf %211, %210 : vector<16x64xf32>
    %213 = math.tanh %212 : vector<16x64xf32>
    %cst_68 = arith.constant 1.000000e+00 : f32
    %214 = vector.broadcast %cst_68 : f32 to vector<16x64xf32>
    %215 = arith.addf %214, %213 : vector<16x64xf32>
    %cst_69 = arith.constant 5.000000e-01 : f32
    %216 = vector.broadcast %cst_69 : f32 to vector<16x64xf32>
    %217 = arith.mulf %216, %215 : vector<16x64xf32>
    %218 = arith.mulf %205, %217 : vector<16x64xf32>
    %c0_70 = arith.constant 0 : index
    %c0_71 = arith.constant 0 : index
    %219 = vector.load %arg11[%c0_70, %c0_71] : memref<64x32xf32, #tpu.memory_space<vmem>>, vector<64x32xf32>
    %cst_72 = arith.constant dense<0.000000e+00> : vector<16x32xf32>
    %220 = tpu.matmul %218, %219, %cst_72 {dimension_numbers = #tpu.dot_dimension_numbers<[1], [0], [0], [1], [0, 0, 1, 1], [], []>} : vector<16x64xf32>, vector<64x32xf32>, vector<16x32xf32> -> vector<16x32xf32>
    %c0_73 = arith.constant 0 : index
    %c0_74 = arith.constant 0 : index
    %221 = vector.load %arg12[%c0_73, %c0_74] : memref<1x32xf32, #tpu.memory_space<vmem>>, vector<1x32xf32>
    %222 = vector.broadcast %221 : vector<1x32xf32> to vector<16x32xf32>
    %223 = arith.addf %220, %222 : vector<16x32xf32>
    %224 = arith.addf %223, %200 : vector<16x32xf32>
    %c0_75 = arith.constant 0 : index
    %c0_76 = arith.constant 0 : index
    %225 = vector.load %arg13[%c0_75, %c0_76] : memref<1x32xf32, #tpu.memory_space<vmem>>, vector<1x32xf32>
    %c0_77 = arith.constant 0 : index
    %c0_78 = arith.constant 0 : index
    %226 = vector.load %arg14[%c0_77, %c0_78] : memref<1x32xf32, #tpu.memory_space<vmem>>, vector<1x32xf32>
    %cst_79 = arith.constant dense<0.000000e+00> : vector<16xf32>
    %227 = vector.multi_reduction <add>, %224, %cst_79 [1] : vector<16x32xf32> to vector<16xf32>
    %228 = vector.shape_cast %227 : vector<16xf32> to vector<16x1xf32>
    %cst_80 = arith.constant 3.200000e+01 : f32
    %229 = vector.broadcast %cst_80 : f32 to vector<16x1xf32>
    %230 = arith.divf %228, %229 : vector<16x1xf32>
    %231 = vector.broadcast %230 : vector<16x1xf32> to vector<16x32xf32>
    %232 = arith.subf %224, %231 : vector<16x32xf32>
    %233 = arith.mulf %232, %232 : vector<16x32xf32>
    %cst_81 = arith.constant dense<0.000000e+00> : vector<16xf32>
    %234 = vector.multi_reduction <add>, %233, %cst_81 [1] : vector<16x32xf32> to vector<16xf32>
    %235 = vector.shape_cast %234 : vector<16xf32> to vector<16x1xf32>
    %cst_82 = arith.constant 3.200000e+01 : f32
    %236 = vector.broadcast %cst_82 : f32 to vector<16x1xf32>
    %237 = arith.divf %235, %236 : vector<16x1xf32>
    %cst_83 = arith.constant 9.99999996E-13 : f32
    %238 = vector.broadcast %cst_83 : f32 to vector<16x1xf32>
    %239 = arith.addf %237, %238 : vector<16x1xf32>
    %240 = math.rsqrt %239 : vector<16x1xf32>
    %241 = vector.broadcast %240 : vector<16x1xf32> to vector<16x32xf32>
    %242 = arith.mulf %232, %241 : vector<16x32xf32>
    %243 = vector.broadcast %225 : vector<1x32xf32> to vector<16x32xf32>
    %244 = arith.mulf %242, %243 : vector<16x32xf32>
    %245 = vector.broadcast %226 : vector<1x32xf32> to vector<16x32xf32>
    %246 = arith.addf %244, %245 : vector<16x32xf32>
    %c0_84 = arith.constant 0 : index
    %c0_85 = arith.constant 0 : index
    %247 = vector.load %arg15[%c0_84, %c0_85] : memref<16x32xf32, #tpu.memory_space<vmem>>, vector<16x32xf32>
    tpu.vector_store %arg15[%c0_84, %c0_85], %246 {strides = array<i32>} : memref<16x32xf32, #tpu.memory_space<vmem>>, vector<16x32xf32>,
    return
  }
  func.func @transform_0(%arg0: i32) -> (i32, i32) {
    %c0_i32 = arith.constant 0 : i32
    %c0_i32_0 = arith.constant 0 : i32
    %c0_i32_1 = arith.constant 0 : i32
    return %c0_i32, %c0_i32_0 : i32, i32
  }
  func.func @transform_1(%arg0: i32) -> (i32, i32) {
    %c0_i32 = arith.constant 0 : i32
    %c0_i32_0 = arith.constant 0 : i32
    %c0_i32_1 = arith.constant 0 : i32
    return %c0_i32, %c0_i32_0 : i32, i32
  }
  func.func @transform_2(%arg0: i32) -> (i32, i32) {
    %c0_i32 = arith.constant 0 : i32
    %c0_i32_0 = arith.constant 0 : i32
    %c0_i32_1 = arith.constant 0 : i32
    return %c0_i32, %c0_i32_0 : i32, i32
  }
  func.func @transform_3(%arg0: i32) -> (i32, i32) {
    %c0_i32 = arith.constant 0 : i32
    %c0_i32_0 = arith.constant 0 : i32
    %c0_i32_1 = arith.constant 0 : i32
    return %c0_i32, %c0_i32_0 : i32, i32
  }
  func.func @transform_4(%arg0: i32) -> (i32, i32) {
    %c0_i32 = arith.constant 0 : i32
    %c0_i32_0 = arith.constant 0 : i32
    %c0_i32_1 = arith.constant 0 : i32
    return %c0_i32, %c0_i32_0 : i32, i32
  }
  func.func @transform_5(%arg0: i32) -> (i32, i32) {
    %c0_i32 = arith.constant 0 : i32
    %c0_i32_0 = arith.constant 0 : i32
    %c0_i32_1 = arith.constant 0 : i32
    return %c0_i32, %c0_i32_0 : i32, i32
  }
  func.func @transform_6(%arg0: i32) -> (i32, i32) {
    %c0_i32 = arith.constant 0 : i32
    %c0_i32_0 = arith.constant 0 : i32
    %c0_i32_1 = arith.constant 0 : i32
    return %c0_i32, %c0_i32_0 : i32, i32
  }
  func.func @transform_7(%arg0: i32) -> (i32, i32) {
    %c0_i32 = arith.constant 0 : i32
    %c0_i32_0 = arith.constant 0 : i32
    %c0_i32_1 = arith.constant 0 : i32
    return %c0_i32, %c0_i32_0 : i32, i32
  }
  func.func @transform_8(%arg0: i32) -> (i32, i32) {
    %c0_i32 = arith.constant 0 : i32
    %c0_i32_0 = arith.constant 0 : i32
    %c0_i32_1 = arith.constant 0 : i32
    return %c0_i32, %c0_i32_0 : i32, i32
  }
  func.func @transform_9(%arg0: i32) -> (i32, i32) {
    %c0_i32 = arith.constant 0 : i32
    %c0_i32_0 = arith.constant 0 : i32
    %c0_i32_1 = arith.constant 0 : i32
    return %c0_i32, %c0_i32_0 : i32, i32
  }
  func.func @transform_10(%arg0: i32) -> (i32, i32) {
    %c0_i32 = arith.constant 0 : i32
    %c0_i32_0 = arith.constant 0 : i32
    %c0_i32_1 = arith.constant 0 : i32
    return %c0_i32, %c0_i32_0 : i32, i32
  }
  func.func @transform_11(%arg0: i32) -> (i32, i32) {
    %c0_i32 = arith.constant 0 : i32
    %c0_i32_0 = arith.constant 0 : i32
    %c0_i32_1 = arith.constant 0 : i32
    return %c0_i32, %c0_i32_0 : i32, i32
  }
  func.func @transform_12(%arg0: i32) -> (i32, i32) {
    %c0_i32 = arith.constant 0 : i32
    %c0_i32_0 = arith.constant 0 : i32
    %c0_i32_1 = arith.constant 0 : i32
    return %c0_i32, %c0_i32_0 : i32, i32
  }
  func.func @transform_13(%arg0: i32) -> (i32, i32) {
    %c0_i32 = arith.constant 0 : i32
    %c0_i32_0 = arith.constant 0 : i32
    %c0_i32_1 = arith.constant 0 : i32
    return %c0_i32, %c0_i32_0 : i32, i32
  }
  func.func @transform_14(%arg0: i32) -> (i32, i32) {
    %c0_i32 = arith.constant 0 : i32
    %c0_i32_0 = arith.constant 0 : i32
    %c0_i32_1 = arith.constant 0 : i32
    return %c0_i32, %c0_i32_0 : i32, i32
  }
}

</mosaic_0001>

<bundles_post_ra>
// kernel: transformer_model_forward.7
= control target key start
LH: loop header
LB: loop body
LE: loop exit
PB: predicated region body
PF: predicated region fallthrough
CT: control target
= control target key end

     0   :  { %v292_v3 = vmov 0.0|0.0   ;;  %vm293_vm0 = vmmov 0   ;;  %v294_v6 = vmov 0.0   ;;  %s376_s0 = inlined_call_operand.vmem [shape: f32[16,32], index: 0, kind: input, shape index: {}]   ;;  %s377_s1 = inlined_call_operand.vmem [shape: f32[32,32], index: 1, kind: input, shape index: {}]   ;;  %s378_s2 = inlined_call_operand.vmem [shape: f32[1,32], index: 2, kind: input, shape index: {}]   ;;  %s379_s3 = inlined_call_operand.vmem [shape: f32[32,16], index: 3, kind: input, shape index: {}]   ;;  %s380_s4 = inlined_call_operand.vmem [shape: f32[1,16], index: 4, kind: input, shape index: {}]   ;;  %s381_s5 = inlined_call_operand.hbm [shape: f32[2,16], index: 5, kind: output, shape index: {}]  }
   0x1   :  { %v28_v0 = vld [vmem:[%s377_s1] sm:$0xff]  ;;  %v29_v1 = vld [vmem:[%s377_s1 + $0x8] sm:$0xff]  ;;  %v30_v2 = vld [vmem:[%s377_s1 + $0x10] sm:$0xff]  ;;  %250 = vmatprep.subr.bf16.mxu0 %v292_v3  ;;  %236 = vmatprep.mubr.msk.f32.mxu0 %vm293_vm0, %v294_v6 }
   0x2   :  { %v251_v4 = vpack.c.bf16 %v29_v1, %v28_v0  ;;  %v31_v5 = vld [vmem:[%s377_s1 + $0x18] sm:$0xff]  ;;  %v22_v7 = vld [vmem:[%s376_s0 + $0x8] sm:$0xff]  ;;  %256 = vmatprep.subr.bf16.mxu1 %v292_v3  ;;  %247 = vmatprep.mubr.msk.f32.mxu1 %vm293_vm0, %v294_v6 }
   0x3   :  { %10 = vsyncpa [#allocation3], 0  ;;  %v254_v8 = vpack.c.bf16 %v31_v5, %v30_v2  ;;  %v24_v9 = vrot.slane %v22_v7, 7  ;;  %v21_v10 = vld [vmem:[%s376_s0] sm:$0xff]  ;;  %vm26_vm1 = vcmask 1040384   ;;  %vm39_vm2 = vcmask 261120  }
   0x4   :  { %252 = vmatpush3.bf16.msra.mxu0 %v251_v4  ;;  %v114_v12 = vld [vmem:[%s379_s3] sm:$0xff]  ;;  %v115_v13 = vld [vmem:[%s379_s3 + $0x8] sm:$0xff]  ;;  %v116_v14 = vld [vmem:[%s379_s3 + $0x10] sm:$0xff]  ;;  %vm198_vm3 = vcmask 123904  }
   0x5   :  { %253 = vmatprep.subr.bf16.mxu0 %v292_v3  ;;  %v27_v11 = vsel %vm26_vm1, %v21_v10, %v24_v9  ;;  %v257_v15 = vpack.c.bf16 %v115_v13, %v114_v12  ;;  %v117_v16 = vld [vmem:[%s379_s3 + $0x18] sm:$0xff]  ;;  %v214_v18 = vld [vmem:[%s378_s2] ss:$0 sm:$0xff]  ;;  %s295_s3 = smov [#allocation2]  }
   0x6   :  { %v260_v17 = vpack.c.bf16 %v117_v16, %v116_v14  ;;  %v216_v23 = vld [vmem:[%s380_s4] ss:$0 sm:$0xff]  ;;  %s206_s15 = sshll.u32 %s295_s3, 4  ;;  %s207_s15 = int_to_ptr.vmem [resolvable:$true] %s206_s15 }
   0x7   :  { %258 = vmatpush3.bf16.msra.mxu1 %v257_v15  ;;  %s268_s2 = scalar_lea.vmem %s207_s15, 32  ;;  %p273_p1 = scmp.lt.s32.totalorder %s207_s15, %s207_s15 }
   0x8   :  { %255 = vmatpush3.bf16.msra.mxu0 %v254_v8  ;;  %259 = vmatprep.subr.bf16.mxu1 %v292_v3  ;;  %p269_p0 = scmp.ne.s32.totalorder %s207_s15, %s268_s2  ;;  %p274_p2 = scmp.lt.s32.totalorder %s268_s2, %s268_s2 }
   0xa   :  { %p275_p3 = por %p274_p2, %p273_p1 }
   0xb   :  { %237 = vmatmul.mubr.msk.f32.vlgmr.msra.gmra.mrb[0].mxu0 %vm39_vm2, %v27_v11  ;;  %261 = vmatpush3.bf16.msra.mxu1 %v260_v17 }
   0xc   :  { %p276_p4 = pnand %p275_p3, %p269_p0 }
  0xde   :  { %v109_v19 = vpop.f32.mrb[0].mxu0 }
  0xdf   :  { %v110_v20 = vadd.f32 %v214_v18, %v109_v19  ;;  %v238_v21 = vpop.f32.mrb[1].mxu0 }
  0xe1   :  { %266 = vtanh.f32 %v110_v20 }
  0xeb   :  { %v267_v22 = vpop.eup %266 }
  0xec   :  { %248 = vmatmul.mubr.msk.f32.vlgmr.msra.gmra.mrb[0].mxu1 %vm39_vm2, %v267_v22 }
 0x1bf   :  { %v194_v24 = vpop.f32.mrb[0].mxu1 }
 0x1c0   :  { %v195_v25 = vadd.f32 %v216_v23, %v194_v24  ;;  %v249_v26 = vpop.f32.mrb[1].mxu1 }
 0x1c2   :  { %199 = vst.msk [vmem:[#allocation2] sm:$0x3] %vm198_vm3, %v195_v25 }
 0x1c3   :  { %279 = shalt.err (!%p276_p4)
}
 0x1c4   :  { %s280_s18 = scalar_lea.hbm %s381_s5, 32 }
 0x1c5   :  { %p281_p5 = scmp.ne.s32.totalorder %s381_s5, %s280_s18  ;;  %p284_p6 = scmp.lt.u32.totalorder %s280_s18, %s381_s5 }
 0x1c7   :  { %p286_p7 = pnand %p284_p6, %p281_p5 }
 0x1c9   :  { %289 = shalt.err (!%p286_p7)
}
 0x1ca   :  { %209 = dma.vmem_to_hbm [thread:$0]  %s207_s15, 32, %s381_s5, [#allocation3]  }
 0x1cb   :  { %290 = dma.done.wait [#allocation3], 32  }
 0x1cc   :  { %291 = vsyncadd [#allocation3], 4294967264 }
 0x1cd   :  { %213 = vsyncpa [#allocation3], 1 }

// kernel: transformer_model_forward.4
= control target key start
LH: loop header
LB: loop body
LE: loop exit
PB: predicated region body
PF: predicated region fallthrough
CT: control target
= control target key end

     0   :  { %vm18_vm0 = vcmask 261120   ;;  %s118_s0 = inlined_call_operand.vmem [shape: f32[16,32], index: 0, kind: input, shape index: {}]   ;;  %s119_s1 = inlined_call_operand.vmem [shape: f32[1,32], index: 1, kind: input, shape index: {}]   ;;  %s120_s2 = inlined_call_operand.vmem [shape: f32[1,32], index: 2, kind: input, shape index: {}]   ;;  %s121_s3 = inlined_call_operand.vmem [shape: f32[16,32], index: 3, kind: output, shape index: {}]  }
   0x1   :  { %v14_v0 = vld [vmem:[%s118_s0] sm:$0xff]  ;;  %v15_v1 = vld [vmem:[%s118_s0 + $0x8] sm:$0xff] }
   0x2   :  { %v19_v2 = vsel %vm18_vm0, %v14_v0, 0.0  ;;  %v22_v3 = vsel %vm18_vm0, %v15_v1, 0.0  ;;  %v68_v21 = vld [vmem:[%s119_s1] ss:$0 sm:$0xff] }
   0x3   :  { %20 = vadd.xlane.f32.xlu0 %v19_v2  ;;  %v69_v23 = vld [vmem:[%s120_s2] ss:$0 sm:$0xff] }
   0x7   :  { %23 = vadd.xlane.f32.xlu0 %v22_v3 }
  0x90   :  { %v21_v4 = vpop.xlane.xlu0 %20 }
  0x91   :  { %v26_v5 = vmul.f32 0.03125, %v21_v4 }
  0x93   :  { %v28_v6 = vsub.f32 %v14_v0, %v26_v5 }
  0x94   :  { %v24_v7 = vpop.xlane.xlu0 %23 }
  0x95   :  { %v27_v8 = vmul.f32 0.03125, %v24_v7  ;;  %v30_v9 = vmul.f32 %v28_v6, %v28_v6 }
  0x97   :  { %v29_v10 = vsub.f32 %v15_v1, %v27_v8  ;;  %v32_v11 = vsel %vm18_vm0, %v30_v9, 0.0 }
  0x98   :  { %33 = vadd.xlane.f32.xlu1 %v32_v11 }
  0x99   :  { %v31_v12 = vmul.f32 %v29_v10, %v29_v10 }
  0x9b   :  { %v35_v13 = vsel %vm18_vm0, %v31_v12, 0.0 }
  0x9c   :  { %36 = vadd.xlane.f32.xlu1 %v35_v13 }
 0x125   :  { %v34_v14 = vpop.xlane.xlu1 %33 }
 0x126   :  { %v38_v15 = vmul.f32 0.03125, %v34_v14 }
 0x128   :  { %v40_v16 = vadd.f32 1e-12, %v38_v15 }
 0x129   :  { %v37_v17 = vpop.xlane.xlu1 %36 }
 0x12a   :  { %70 = vrsqrt.f32 %v40_v16  ;;  %v39_v18 = vmul.f32 0.03125, %v37_v17 }
 0x12c   :  { %v41_v19 = vadd.f32 1e-12, %v39_v18 }
 0x12e   :  { %72 = vrsqrt.f32 %v41_v19 }
 0x134   :  { %v71_v20 = vpop.eup %70 }
 0x135   :  { %v44_v22 = vmul.f32 %v71_v20, %v28_v6 }
 0x137   :  { %v52_v24 = vmul.f32 %v68_v21, %v44_v22 }
 0x138   :  { %v73_v25 = vpop.eup %72 }
 0x139   :  { %v60_v26 = vadd.f32 %v69_v23, %v52_v24  ;;  %v45_v27 = vmul.f32 %v73_v25, %v29_v10 }
 0x13b   :  { %62 = vst.msk [vmem:[%s121_s3] sm:$0xff] %vm18_vm0, %v60_v26  ;;  %v53_v28 = vmul.f32 %v68_v21, %v45_v27 }
 0x13d   :  { %v61_v29 = vadd.f32 %v69_v23, %v53_v28 }
 0x13f   :  { %63 = vst.msk [vmem:[%s121_s3 + $0x8] sm:$0xff] %vm18_vm0, %v61_v29 }

// kernel: transformer_model_forward.5
= control target key start
LH: loop header
LB: loop body
LE: loop exit
PB: predicated region body
PF: predicated region fallthrough
CT: control target
= control target key end

     0   :  { %vm60_vm0 = vcmask 261120   ;;  %v2248_v8 = vmov 0.0   ;;  %vm2249_vm1 = vmmov 0   ;;  %s2251_s26 = smov 96   ;;  %s2252_s27 = smov 80   ;;  %vm146_vm2 = vcmask 64512   ;;  %s2607_s2 = inlined_call_operand.vmem [shape: f32[32,96], index: 2, kind: input, shape index: {}]   ;;  %s2608_s0 = inlined_call_operand.vmem [shape: f32[16,32], index: 0, kind: input, shape index: {}]   ;;  %s2609_s3 = inlined_call_operand.vmem [shape: f32[1,96], index: 3, kind: input, shape index: {}]   ;;  %s2610_s1 = inlined_call_operand.vmem [shape: f32[2,8], index: 1, kind: input, shape index: {}]   ;;  %s2611_s4 = inlined_call_operand.vmem [shape: f32[32,32], index: 4, kind: input, shape index: {}]   ;;  %s2612_s5 = inlined_call_operand.vmem [shape: f32[1,32], index: 5, kind: input, shape index: {}]   ;;  %s2613_s8 = inlined_call_operand.vmem [shape: f32[32,64], index: 8, kind: input, shape index: {}]   ;;  %s2614_s6 = inlined_call_operand.vmem [shape: f32[1,32], index: 6, kind: input, shape index: {}]   ;;  %s2615_s7 = inlined_call_operand.vmem [shape: f32[1,32], index: 7, kind: input, shape index: {}]   ;;  %s2616_s10 = inlined_call_operand.vmem [shape: f32[64,32], index: 10, kind: input, shape index: {}]   ;;  %s2617_s9 = inlined_call_operand.vmem [shape: f32[1,64], index: 9, kind: input, shape index: {}]   ;;  %s2618_s11 = inlined_call_operand.vmem [shape: f32[1,32], index: 11, kind: input, shape index: {}]   ;;  %s2619_s12 = inlined_call_operand.vmem [shape: f32[1,32], index: 12, kind: input, shape index: {}]   ;;  %s2620_s13 = inlined_call_operand.vmem [shape: f32[1,32], index: 13, kind: input, shape index: {}]   ;;  %s2621_s14 = inlined_call_operand.vmem [shape: f32[16,32], index: 14, kind: output, shape index: {}]  }
   0x1   :  { %v49_v0 = vld [vmem:[%s2607_s2] sm:$0xff]  ;;  %v50_v1 = vld [vmem:[%s2607_s2 + $0x8] sm:$0xff]  ;;  %v51_v2 = vld [vmem:[%s2607_s2 + $0x10] sm:$0xff]  ;;  %2037 = vmatprep.subr.mxu0 %v2248_v8  ;;  %2039 = vmatprep.mubr.msk.f32.mxu0 %vm2249_vm1, %v2248_v8  ;;  %s2253_s28 = smov 88   ;;  %s2254_s29 = smov 72   ;;  %v222_v29 = vlaneseq  ;;  %vm828_vm3 = vcmask 130048  }
   0x2   :  { %v2148_v3 = vpack.c.bf16 %v50_v1, %v49_v0  ;;  %v52_v4 = vld [vmem:[%s2607_s2 + $0x18] sm:$0xff]  ;;  %v2354_v5 = vld [vmem:[%s2608_s0] sm:$0xff]  ;;  %v2361_v7 = vld [vmem:[%s2608_s0 + $0x8] sm:$0xff]  ;;  %s2250_s0 = smov 120   ;;  %s2256_s30 = smov 104   ;;  %vm830_vm4 = vcmask 195584  }
   0x3   :  { %v2152_v6 = vpack.c.bf16 %v52_v4, %v51_v2  ;;  %2024 = vmatprep.mubr.msk.f32.mxu1 %vm60_vm0, %v2354_v5  ;;  %v1916_v9 = vld [vmem:[%s2609_s3] ss:$0 sm:$0xff]  ;;  %s2255_s3 = smov 112   ;;  %s2257_s15 = smov 56   ;;  %v223_v30 = vshrl.u32 %v222_v29, 7  ;;  %vm1782_vm5 = vcmask 523264  }
   0x4   :  { %2149 = vmatprep.subr.bf16.mxu1 %v2148_v3  ;;  %s2258_s16 = smov 64   ;;  %v142_v32 = vld [vmem:[%s2610_s1] sm:$0x3]  ;;  %s2259_s1 = smov 40  }
   0x5   :  { %2151 = vmatpush3.bf16.msra.mxu1 %v2148_v3  ;;  %v224_v31 = vsub.s32 0, %v223_v30  ;;  %v912_v48 = vsub.s32 1, %v223_v30  ;;  %s2260_s19 = smov 48   ;;  %s2261_s20 = smov 8  }
   0x6   :  { %2153 = vmatprep.subr.bf16.mxu1 %v2152_v6  ;;  %s2262_s21 = smov 16   ;;  %s2263_s22 = smov 24  }
   0x7   :  { %v225_v33 = vrot.slane %v142_v32, %v224_v31  ;;  %v913_v54 = vrot.slane %v142_v32, %v912_v48 }
   0x9   :  { %2155 = vmatpush3.bf16.msra.mxu1 %v2152_v6 }
   0xa   :  { %2027 = vmatprep.subr.mxu1 %v2248_v8 }
   0xc   :  { %2025 = vmatmul.mubr.msk.f32.vlgmr.msra.gmra.mrb[0].mxu1 %vm60_vm0, %v2361_v7 }
   0xd   :  { %2029 = vmatprep.mubr.msk.f32.mxu1 %vm2249_vm1, %v2248_v8 }
  0xdf   :  { %v2026_v10 = vpop.f32.mrb[0].mxu1 }
  0xe0   :  { %v133_v11 = vpop.f32.mrb[1].mxu1  ;;  %v2382_v13 = vadd.f32 %v2026_v10, %v1916_v9 }
  0xe1   :  { %v2374_v12 = vadd.f32 %v1916_v9, %v133_v11 }
  0xe3   :  { %314 = vrot.lane.b32.xlu1 %v2374_v12, %s2250_s0  ;;  %144 = vrot.lane.b32.xlu0 %v2374_v12, %s2251_s26 }
  0xe7   :  { %483 = vrot.lane.b32.xlu1 %v2374_v12, %s2252_s27  ;;  %316 = vrot.lane.b32.xlu0 %v2374_v12, %s2253_s28 }
  0xeb   :  { %650 = vrot.lane.b32.xlu1 %v2374_v12, %s2254_s29  ;;  %481 = vrot.lane.b32.xlu0 %v2374_v12, %s2255_s3 }
  0xef   :  { %833 = vrot.lane.b32.xlu1 %v2382_v13, %s2251_s26  ;;  %648 = vrot.lane.b32.xlu0 %v2374_v12, %s2256_s30 }
  0xf3   :  { %1002 = vrot.lane.b32.xlu1 %v2382_v13, %s2250_s0  ;;  %1004 = vrot.lane.b32.xlu0 %v2382_v13, %s2253_s28 }
  0xf7   :  { %1169 = vrot.lane.b32.xlu1 %v2382_v13, %s2255_s3  ;;  %1171 = vrot.lane.b32.xlu0 %v2382_v13, %s2252_s27 }
  0xfb   :  { %1336 = vrot.lane.b32.xlu1 %v2382_v13, %s2256_s30  ;;  %1338 = vrot.lane.b32.xlu0 %v2382_v13, %s2254_s29 }
  0xff   :  { %405 = vrot.lane.b32.xlu1 %v2374_v12, %s2257_s15  ;;  %238 = vrot.lane.b32.xlu0 %v2374_v12, %s2258_s16 }
 0x155   :  { %v315_v14 = vpop.permute.xlu1 %314  ;;  %v145_v15 = vpop.permute.xlu0 %144 }
 0x156   :  { %2028 = vmatpush3.xpose.msk.msra.mxu1 %vm146_vm2, %v145_v15 }
 0x157   :  { %2032 = vmatprep.subr.mxu1 %v2248_v8 }
 0x159   :  { %v484_v16 = vpop.permute.xlu1 %483  ;;  %2030 = vmatmul.mubr.msk.f32.vlgmr.msra.gmra.mrb[2].mxu1 %vm146_vm2, %v2374_v12  ;;  %v317_v17 = vpop.permute.xlu0 %316 }
 0x15a   :  { %2038 = vmatpush3.xpose.msk.msra.mxu0 %vm146_vm2, %v317_v17  ;;  %2034 = vmatprep.mubr.msk.f32.mxu1 %vm2249_vm1, %v2248_v8 }
 0x15b   :  { %2047 = vmatprep.subr.mxu0 %v2248_v8 }
 0x15d   :  { %v651_v18 = vpop.permute.xlu1 %650  ;;  %2040 = vmatmul.mubr.msk.f32.vlgmr.msra.gmra.mrb[0].mxu0 %vm146_vm2, %v315_v14  ;;  %v482_v19 = vpop.permute.xlu0 %481 }
 0x15e   :  { %2048 = vmatpush3.xpose.msk.msra.mxu0 %vm146_vm2, %v484_v16  ;;  %2049 = vmatprep.mubr.msk.f32.mxu0 %vm2249_vm1, %v2248_v8 }
 0x15f   :  { %2057 = vmatprep.subr.mxu0 %v2248_v8 }
 0x161   :  { %2050 = vmatmul.mubr.msk.f32.vlgmr.msra.gmra.mrb[2].mxu0 %vm146_vm2, %v482_v19  ;;  %v649_v20 = vpop.permute.xlu0 %648  ;;  %v834_v21 = vpop.permute.xlu1 %833 }
 0x162   :  { %2058 = vmatpush3.xpose.msk.msra.mxu0 %vm146_vm2, %v651_v18  ;;  %2059 = vmatprep.mubr.msk.f32.mxu0 %vm2249_vm1, %v2248_v8 }
 0x163   :  { %2067 = vmatprep.subr.mxu0 %v2248_v8 }
 0x165   :  { %2060 = vmatmul.mubr.msk.f32.vlgmr.msra.gmra.mrb[4].mxu0 %vm146_vm2, %v649_v20  ;;  %v1005_v22 = vpop.permute.xlu0 %1004  ;;  %v1003_v23 = vpop.permute.xlu1 %1002 }
 0x166   :  { %2068 = vmatpush3.xpose.msk.msra.mxu0 %vm146_vm2, %v834_v21  ;;  %2069 = vmatprep.mubr.msk.f32.mxu0 %vm2249_vm1, %v2248_v8 }
 0x167   :  { %2077 = vmatprep.subr.mxu0 %v2248_v8 }
 0x169   :  { %2070 = vmatmul.mubr.msk.f32.vlgmr.msra.gmra.mrb[6].mxu0 %vm146_vm2, %v2382_v13  ;;  %v1172_v24 = vpop.permute.xlu0 %1171  ;;  %v1170_v26 = vpop.permute.xlu1 %1169 }
 0x16a   :  { %2078 = vmatpush3.xpose.msk.msra.mxu0 %vm146_vm2, %v1005_v22  ;;  %2079 = vmatprep.mubr.msk.f32.mxu0 %vm2249_vm1, %v2248_v8 }
 0x16b   :  { %2087 = vmatprep.subr.mxu0 %v2248_v8 }
 0x16d   :  { %2080 = vmatmul.mubr.msk.f32.vlgmr.msra.gmra.mrb[8].mxu0 %vm146_vm2, %v1003_v23  ;;  %v1339_v25 = vpop.permute.xlu0 %1338  ;;  %v1337_v28 = vpop.permute.xlu1 %1336 }
 0x16e   :  { %2088 = vmatpush3.xpose.msk.msra.mxu0 %vm146_vm2, %v1172_v24  ;;  %2089 = vmatprep.mubr.msk.f32.mxu0 %vm2249_vm1, %v2248_v8 }
 0x16f   :  { %2097 = vmatprep.subr.mxu0 %v2248_v8 }
 0x171   :  { %2090 = vmatmul.mubr.msk.f32.vlgmr.msra.gmra.mrb[10].mxu0 %vm146_vm2, %v1170_v26  ;;  %v239_v27 = vpop.permute.xlu0 %238  ;;  %v2451_v17 = vpop.permute.xlu1 %405 }
 0x172   :  { %2033 = vmatpush3.msra.mxu1 %v239_v27  ;;  %2098 = vmatpush3.xpose.msk.msra.mxu0 %vm146_vm2, %v1339_v25 }
 0x173   :  { %2099 = vmatprep.mubr.msk.f32.mxu0 %vm2249_vm1, %v2248_v8  ;;  %2042 = vmatprep.subr.mxu1 %v2248_v8 }
 0x175   :  { %2100 = vmatmul.mubr.msk.f32.vlgmr.msra.gmra.mrb[12].mxu0 %vm146_vm2, %v1337_v28 }
 0x22c   :  { %v217_v34 = vpop.f32.mrb[2].mxu1 }
 0x22d   :  { %v221_v35 = vmul.f32 0.35355338, %v217_v34  ;;  %v2031_v36 = vpop.f32.mrb[3].mxu1 }
 0x22f   :  { %v226_v37 = vadd.f32 %v225_v33, %v221_v35 }
 0x230   :  { %v388_v38 = vpop.f32.mrb[0].mxu0 }
 0x231   :  { %v392_v39 = vmul.f32 0.35355338, %v388_v38  ;;  %v2041_v40 = vpop.f32.mrb[1].mxu0  ;;  %v227_v41 = vsel %vm146_vm2, %v226_v37, -inf }
 0x232   :  { %228 = vmax.xlane.f32.xlu0 %v227_v41 }
 0x233   :  { %v393_v42 = vadd.f32 %v392_v39, %v225_v33 }
 0x234   :  { %v555_v43 = vpop.f32.mrb[2].mxu0 }
 0x235   :  { %v559_v44 = vmul.f32 0.35355338, %v555_v43  ;;  %v2051_v45 = vpop.f32.mrb[3].mxu0  ;;  %v394_v46 = vsel %vm146_vm2, %v393_v42, -inf }
 0x236   :  { %395 = vmax.xlane.f32.xlu1 %v394_v46 }
 0x237   :  { %v560_v47 = vadd.f32 %v559_v44, %v225_v33 }
 0x238   :  { %v722_v49 = vpop.f32.mrb[4].mxu0 }
 0x239   :  { %v726_v50 = vmul.f32 0.35355338, %v722_v49  ;;  %v2061_v51 = vpop.f32.mrb[5].mxu0  ;;  %v561_v52 = vsel %vm146_vm2, %v560_v47, -inf }
 0x23a   :  { %562 = vmax.xlane.f32.xlu0 %v561_v52 }
 0x23b   :  { %v727_v53 = vadd.f32 %v726_v50, %v225_v33 }
 0x23c   :  { %v905_v55 = vpop.f32.mrb[6].mxu0 }
 0x23d   :  { %v909_v56 = vmul.f32 0.35355338, %v905_v55  ;;  %v2071_v57 = vpop.f32.mrb[7].mxu0  ;;  %v728_v58 = vsel %vm146_vm2, %v727_v53, -inf }
 0x23e   :  { %729 = vmax.xlane.f32.xlu0 %v728_v58 }
 0x23f   :  { %v914_v59 = vadd.f32 %v913_v54, %v909_v56 }
 0x240   :  { %v1076_v60 = vpop.f32.mrb[8].mxu0 }
 0x241   :  { %v1080_v61 = vmul.f32 0.35355338, %v1076_v60  ;;  %v2081_v62 = vpop.f32.mrb[9].mxu0  ;;  %v915_v63 = vsel %vm146_vm2, %v914_v59, -inf }
 0x242   :  { %916 = vmax.xlane.f32.xlu1 %v915_v63 }
 0x243   :  { %v1081_v0 = vadd.f32 %v1080_v61, %v913_v54 }
 0x244   :  { %v1243_v1 = vpop.f32.mrb[10].mxu0 }
 0x245   :  { %v1247_v2 = vmul.f32 0.35355338, %v1243_v1  ;;  %v2091_v3 = vpop.f32.mrb[11].mxu0  ;;  %v1082_v4 = vsel %vm146_vm2, %v1081_v0, -inf }
 0x246   :  { %1083 = vmax.xlane.f32.xlu0 %v1082_v4 }
 0x247   :  { %v1248_v6 = vadd.f32 %v1247_v2, %v913_v54 }
 0x248   :  { %v1410_v9 = vpop.f32.mrb[12].mxu0 }
 0x249   :  { %v1414_v10 = vmul.f32 0.35355338, %v1410_v9  ;;  %v2101_v11 = vpop.f32.mrb[13].mxu0  ;;  %v1249_v14 = vsel %vm146_vm2, %v1248_v6, -inf }
 0x24a   :  { %1250 = vmax.xlane.f32.xlu1 %v1249_v14 }
 0x24b   :  { %v1415_v15 = vadd.f32 %v1414_v10, %v913_v54 }
 0x24d   :  { %v1416_v16 = vsel %vm146_vm2, %v1415_v15, -inf }
 0x24e   :  { %1417 = vmax.xlane.f32.xlu0 %v1416_v16 }
 0x25b   :  { %739 = vrot.lane.b32.xlu1 %v2374_v12, %s2259_s1 }
 0x264   :  { %572 = vrot.lane.b32.xlu0 %v2374_v12, %s2260_s19 }
 0x2bf   :  { %v229_v18 = vpop.xlane.xlu0 %228 }
 0x2c0   :  { %v230_v19 = vsub.f32 %v226_v37, %v229_v18 }
 0x2c2   :  { %v231_v20 = vmul.f32 1.442695, %v230_v19 }
 0x2c3   :  { %v396_v21 = vpop.xlane.xlu1 %395 }
 0x2c4   :  { %2204 = vpow2.f32 %v231_v20  ;;  %v397_v22 = vsub.f32 %v393_v42, %v396_v21 }
 0x2c6   :  { %v398_v23 = vmul.f32 1.442695, %v397_v22 }
 0x2c7   :  { %v563_v24 = vpop.xlane.xlu0 %562 }
 0x2c8   :  { %2206 = vpow2.f32 %v398_v23  ;;  %v564_v25 = vsub.f32 %v560_v47, %v563_v24 }
 0x2ca   :  { %v565_v26 = vmul.f32 1.442695, %v564_v25 }
 0x2cb   :  { %v730_v27 = vpop.xlane.xlu0 %729 }
 0x2cc   :  { %2208 = vpow2.f32 %v565_v26  ;;  %v731_v28 = vsub.f32 %v727_v53, %v730_v27 }
 0x2ce   :  { %v2205_v29 = vpop.eup %2204  ;;  %v732_v30 = vmul.f32 1.442695, %v731_v28 }
 0x2cf   :  { %v233_v12 = vsel %vm146_vm2, %v2205_v29, 0.0  ;;  %v917_v37 = vpop.xlane.xlu1 %916 }
 0x2d0   :  { %2210 = vpow2.f32 %v732_v30  ;;  %234 = vadd.xlane.f32.xlu1 %v233_v12  ;;  %v918_v38 = vsub.f32 %v914_v59, %v917_v37  ;;  %v1521_v37 = vld [vmem:[%s2611_s4 + $0x18] sm:$0xff] }
 0x2d2   :  { %v2207_v31 = vpop.eup %2206  ;;  %v919_v42 = vmul.f32 1.442695, %v918_v38 }
 0x2d3   :  { %v400_v32 = vsel %vm146_vm2, %v2207_v31, 0.0  ;;  %v1084_v39 = vpop.xlane.xlu0 %1083 }
 0x2d4   :  { %401 = vadd.xlane.f32.xlu0 %v400_v32  ;;  %v1085_v41 = vsub.f32 %v1081_v0, %v1084_v39  ;;  %2212 = vpow2.f32 %v919_v42 }
 0x2d6   :  { %v2209_v33 = vpop.eup %2208  ;;  %v1086_v45 = vmul.f32 1.442695, %v1085_v41 }
 0x2d7   :  { %v567_v34 = vsel %vm146_vm2, %v2209_v33, 0.0  ;;  %v1251_v40 = vpop.xlane.xlu1 %1250 }
 0x2d8   :  { %568 = vadd.xlane.f32.xlu1 %v567_v34  ;;  %v1252_v43 = vsub.f32 %v1248_v6, %v1251_v40  ;;  %2214 = vpow2.f32 %v1086_v45  ;;  %v1519_v34 = vld [vmem:[%s2611_s4 + $0x8] sm:$0xff] }
 0x2da   :  { %v2456_v35 = vpop.eup %2210  ;;  %v1253_v46 = vmul.f32 1.442695, %v1252_v43 }
 0x2db   :  { %v734_v36 = vsel %vm146_vm2, %v2456_v35, 0.0  ;;  %v1418_v44 = vpop.xlane.xlu0 %1417  ;;  %v740_v57 = vpop.permute.xlu1 %739 }
 0x2dc   :  { %735 = vadd.xlane.f32.xlu0 %v734_v36  ;;  %v1419_v47 = vsub.f32 %v1415_v15, %v1418_v44  ;;  %2216 = vpow2.f32 %v1253_v46  ;;  %v1520_v36 = vld [vmem:[%s2611_s4 + $0x10] sm:$0xff] }
 0x2dd   :  { %v2160_v38 = vpack.c.bf16 %v1521_v37, %v1520_v36  ;;  %v1767_v36 = vld [vmem:[%s2616_s10] sm:$0xff]  ;;  %v1768_v37 = vld [vmem:[%s2616_s10 + $0x8] sm:$0xff] }
 0x2de   :  { %v1420_v48 = vmul.f32 1.442695, %v1419_v47  ;;  %v2213_v49 = vpop.eup %2212 }
 0x2df   :  { %v921_v51 = vsel %vm146_vm2, %v2213_v49, 0.0  ;;  %v573_v58 = vpop.permute.xlu0 %572 }
 0x2e0   :  { %2218 = vpow2.f32 %v1420_v48 }
 0x2e2   :  { %v2464_v50 = vpop.eup %2214 }
 0x2e3   :  { %v1088_v54 = vsel %vm146_vm2, %v2464_v50, 0.0 }
 0x2e6   :  { %v2467_v52 = vpop.eup %2216 }
 0x2e7   :  { %v1255_v53 = vsel %vm146_vm2, %v2467_v52, 0.0 }
 0x2e9   :  { %1093 = vrot.lane.b32.xlu1 %v2382_v13, %s2257_s15 }
 0x2ea   :  { %v2473_v55 = vpop.eup %2218 }
 0x2eb   :  { %v1422_v56 = vsel %vm146_vm2, %v2473_v55, 0.0 }
 0x2f2   :  { %926 = vrot.lane.b32.xlu0 %v2382_v13, %s2258_s16 }
 0x30d   :  { %922 = vadd.xlane.f32.xlu1 %v921_v51 }
 0x311   :  { %1256 = vadd.xlane.f32.xlu1 %v1255_v53  ;;  %1089 = vadd.xlane.f32.xlu0 %v1088_v54 }
 0x315   :  { %1423 = vadd.xlane.f32.xlu1 %v1422_v56 }
 0x326   :  { %1427 = vrot.lane.b32.xlu1 %v2382_v13, %s2259_s1 }
 0x327   :  { %1260 = vrot.lane.b32.xlu0 %v2382_v13, %s2260_s19 }
 0x35d   :  { %v235_v59 = vpop.xlane.xlu1 %234 }
 0x35e   :  { %2220 = vrcp.f32 %v235_v59  ;;  %v1943_v59 = vld [vmem:[%s2612_s5] ss:$0 sm:$0xff] }
 0x361   :  { %v402_v60 = vpop.xlane.xlu0 %401 }
 0x362   :  { %2222 = vrcp.f32 %v402_v60 }
 0x365   :  { %v569_v61 = vpop.xlane.xlu1 %568 }
 0x366   :  { %2224 = vrcp.f32 %v569_v61 }
 0x368   :  { %v2221_v62 = vpop.eup %2220 }
 0x369   :  { %v237_v63 = vmul.f32 %v2221_v62, %v2205_v29  ;;  %v736_v0 = vpop.xlane.xlu0 %735  ;;  %v1094_v10 = vpop.permute.xlu1 %1093 }
 0x36a   :  { %2226 = vrcp.f32 %v736_v0 }
 0x36b   :  { %2035 = vmatmul.mubr.msk.f32.vlgmr.msra.gmra.mrb[4].mxu1 %vm146_vm2, %v237_v63 }
 0x36c   :  { %v2223_v1 = vpop.eup %2222  ;;  %2043 = vmatpush3.msra.mxu1 %v2451_v17  ;;  %2044 = vmatprep.mubr.msk.f32.mxu1 %vm2249_vm1, %v2248_v8 }
 0x36d   :  { %v404_v13 = vmul.f32 %v2223_v1, %v2207_v31  ;;  %2052 = vmatprep.subr.mxu1 %v2248_v8  ;;  %v927_v9 = vpop.permute.xlu0 %926 }
 0x36f   :  { %2045 = vmatmul.mubr.msk.f32.vlgmr.msra.gmra.mrb[6].mxu1 %vm146_vm2, %v404_v13 }
 0x370   :  { %v2225_v2 = vpop.eup %2224  ;;  %2053 = vmatpush3.msra.mxu1 %v573_v58  ;;  %2054 = vmatprep.mubr.msk.f32.mxu1 %vm2249_vm1, %v2248_v8 }
 0x371   :  { %v571_v3 = vmul.f32 %v2225_v2, %v2209_v33  ;;  %2062 = vmatprep.subr.mxu1 %v2248_v8 }
 0x373   :  { %2055 = vmatmul.mubr.msk.f32.vlgmr.msra.gmra.mrb[8].mxu1 %vm146_vm2, %v571_v3 }
 0x374   :  { %v2227_v4 = vpop.eup %2226  ;;  %2063 = vmatpush3.msra.mxu1 %v740_v57  ;;  %2064 = vmatprep.mubr.msk.f32.mxu1 %vm2249_vm1, %v2248_v8 }
 0x375   :  { %v738_v6 = vmul.f32 %v2227_v4, %v2456_v35  ;;  %2072 = vmatprep.subr.mxu1 %v2248_v8 }
 0x377   :  { %2065 = vmatmul.mubr.msk.f32.vlgmr.msra.gmra.mrb[10].mxu1 %vm146_vm2, %v738_v6 }
 0x378   :  { %2073 = vmatpush3.msra.mxu1 %v927_v9  ;;  %2074 = vmatprep.mubr.msk.f32.mxu1 %vm2249_vm1, %v2248_v8 }
 0x379   :  { %2082 = vmatprep.subr.mxu1 %v2248_v8 }
 0x39a   :  { %v923_v11 = vpop.xlane.xlu1 %922 }
 0x39b   :  { %2228 = vrcp.f32 %v923_v11 }
 0x39e   :  { %v1257_v14 = vpop.xlane.xlu1 %1256  ;;  %v1090_v15 = vpop.xlane.xlu0 %1089 }
 0x39f   :  { %2230 = vrcp.f32 %v1090_v15 }
 0x3a0   :  { %2232 = vrcp.f32 %v1257_v14 }
 0x3a2   :  { %v1424_v16 = vpop.xlane.xlu1 %1423  ;;  %v1261_v22 = vpop.permute.xlu0 %1260 }
 0x3a3   :  { %2234 = vrcp.f32 %v1424_v16 }
 0x3a5   :  { %v2229_v17 = vpop.eup %2228 }
 0x3a6   :  { %v925_v18 = vmul.f32 %v2229_v17, %v2213_v49  ;;  %v1428_v25 = vpop.permute.xlu1 %1427  ;;  %v1658_v17 = vld [vmem:[%s2613_s8 + $0x8] sm:$0xff] }
 0x3a8   :  { %2075 = vmatmul.mubr.msk.f32.vlgmr.msra.gmra.mrb[12].mxu1 %vm146_vm2, %v925_v18 }
 0x3a9   :  { %2083 = vmatpush3.msra.mxu1 %v1094_v10  ;;  %2084 = vmatprep.mubr.msk.f32.mxu1 %vm2249_vm1, %v2248_v8  ;;  %v2231_v19 = vpop.eup %2230 }
 0x3aa   :  { %2092 = vmatprep.subr.mxu1 %v2248_v8  ;;  %v1092_v20 = vmul.f32 %v2231_v19, %v2464_v50  ;;  %v2233_v21 = vpop.eup %2232  ;;  %v1659_v19 = vld [vmem:[%s2613_s8 + $0x10] sm:$0xff] }
 0x3ab   :  { %v1259_v23 = vmul.f32 %v2233_v21, %v2467_v52 }
 0x3ac   :  { %2085 = vmatmul.mubr.msk.f32.vlgmr.msra.gmra.mrb[14].mxu1 %vm146_vm2, %v1092_v20  ;;  %v1660_v20 = vld [vmem:[%s2613_s8 + $0x18] sm:$0xff] }
 0x3ad   :  { %2093 = vmatpush3.msra.mxu1 %v1261_v22  ;;  %2094 = vmatprep.mubr.msk.f32.mxu1 %vm2249_vm1, %v2248_v8  ;;  %v2235_v24 = vpop.eup %2234  ;;  %v2168_v21 = vpack.c.bf16 %v1660_v20, %v1659_v19 }
 0x3ae   :  { %2102 = vmatprep.subr.mxu1 %v2248_v8  ;;  %v1426_v26 = vmul.f32 %v2235_v24, %v2473_v55 }
 0x3b0   :  { %2095 = vmatmul.mubr.msk.f32.vlgmr.msra.gmra.mrb[16].mxu1 %vm146_vm2, %v1259_v23 }
 0x3b1   :  { %2103 = vmatpush3.msra.mxu1 %v1428_v25  ;;  %2104 = vmatprep.mubr.msk.f32.mxu1 %vm2249_vm1, %v2248_v8  ;;  %v1518_v8 = vld [vmem:[%s2611_s4] sm:$0xff] }
 0x3b2   :  { %v2156_v35 = vpack.c.bf16 %v1519_v34, %v1518_v8 }
 0x3b4   :  { %2105 = vmatmul.mubr.msk.f32.vlgmr.msra.gmra.mrb[18].mxu1 %vm146_vm2, %v1426_v26  ;;  %2157 = vmatprep.subr.bf16.mxu0 %v2156_v35 }
 0x3b5   :  { %2159 = vmatpush3.bf16.msra.mxu0 %v2156_v35 }
 0x3b6   :  { %2161 = vmatprep.subr.bf16.mxu0 %v2160_v38 }
 0x3b9   :  { %2163 = vmatpush3.bf16.msra.mxu0 %v2160_v38  ;;  %v2172_v38 = vpack.c.bf16 %v1768_v37, %v1767_v36  ;;  %v1955_v36 = vld [vmem:[%s2620_s13] ss:$0 sm:$0xff] }
 0x3bb   :  { %2173 = vmatprep.subr.bf16.mxu0 %v2172_v38 }
 0x43e   :  { %v310_v27 = vpop.f32.mrb[4].mxu1 }
 0x43f   :  { %v2036_v28 = vpop.f32.mrb[5].mxu1 }
 0x442   :  { %v477_v29 = vpop.f32.mrb[6].mxu1 }
 0x443   :  { %816 = vrot.lane.b32.xlu0 %v477_v29, %s2261_s20  ;;  %v2046_v30 = vpop.f32.mrb[7].mxu1  ;;  %v1946_v29 = vld [vmem:[%s2614_s6] ss:$0 sm:$0xff] }
 0x446   :  { %v644_v12 = vpop.f32.mrb[8].mxu1 }
 0x447   :  { %820 = vrot.lane.b32.xlu1 %v644_v12, %s2262_s21  ;;  %v2056_v31 = vpop.f32.mrb[9].mxu1  ;;  %v1947_v12 = vld [vmem:[%s2615_s7] ss:$0 sm:$0xff] }
 0x44a   :  { %v811_v32 = vpop.f32.mrb[10].mxu1 }
 0x44b   :  { %824 = vrot.lane.b32.xlu1 %v811_v32, %s2263_s22  ;;  %v2066_v33 = vpop.f32.mrb[11].mxu1 }
 0x47b   :  { %v998_v39 = vpop.f32.mrb[12].mxu1 }
 0x47c   :  { %v2076_v40 = vpop.f32.mrb[13].mxu1 }
 0x47d   :  { %v1770_v40 = vld [vmem:[%s2616_s10 + $0x18] sm:$0xff] }
 0x47f   :  { %v1165_v41 = vpop.f32.mrb[14].mxu1 }
 0x480   :  { %1504 = vrot.lane.b32.xlu0 %v1165_v41, %s2261_s20  ;;  %v2086_v42 = vpop.f32.mrb[15].mxu1 }
 0x481   :  { %v1771_v42 = vld [vmem:[%s2616_s10 + $0x20] sm:$0xff] }
 0x483   :  { %v1332_v43 = vpop.f32.mrb[16].mxu1 }
 0x484   :  { %1508 = vrot.lane.b32.xlu0 %v1332_v43, %s2262_s21  ;;  %v2096_v44 = vpop.f32.mrb[17].mxu1  ;;  %v1772_v43 = vld [vmem:[%s2616_s10 + $0x28] sm:$0xff] }
 0x485   :  { %v2180_v44 = vpack.c.bf16 %v1772_v43, %v1771_v42 }
 0x487   :  { %v1499_v45 = vpop.f32.mrb[18].mxu1 }
 0x488   :  { %1512 = vrot.lane.b32.xlu1 %v1499_v45, %s2263_s22  ;;  %v2106_v46 = vpop.f32.mrb[19].mxu1  ;;  %v1773_v45 = vld [vmem:[%s2616_s10 + $0x30] sm:$0xff] }
 0x489   :  { %v1774_v46 = vld [vmem:[%s2616_s10 + $0x38] sm:$0xff] }
 0x4b5   :  { %v817_v47 = vpop.permute.xlu0 %816 }
 0x4b6   :  { %v827_v49 = vsel %vm146_vm2, %v310_v27, %v817_v47  ;;  %v2184_v47 = vpack.c.bf16 %v1774_v46, %v1773_v45 }
 0x4b9   :  { %v821_v48 = vpop.permute.xlu1 %820 }
 0x4ba   :  { %v829_v50 = vsel %vm828_vm3, %v827_v49, %v821_v48  ;;  %v1948_v48 = vld [vmem:[%s2617_s9] ss:$0 sm:$0xff] }
 0x4bd   :  { %v825_v51 = vpop.permute.xlu1 %824 }
 0x4be   :  { %v831_v52 = vsel %vm830_vm4, %v829_v50, %v825_v51 }
 0x4bf   :  { %2115 = vmatprep.mubr.msk.f32.mxu0 %vm60_vm0, %v831_v52 }
 0x4f2   :  { %v1505_v53 = vpop.permute.xlu0 %1504 }
 0x4f3   :  { %v1515_v55 = vsel %vm146_vm2, %v998_v39, %v1505_v53  ;;  %v1769_v39 = vld [vmem:[%s2616_s10 + $0x10] sm:$0xff] }
 0x4f4   :  { %v2176_v41 = vpack.c.bf16 %v1770_v40, %v1769_v39 }
 0x4f6   :  { %v1509_v54 = vpop.permute.xlu0 %1508 }
 0x4f7   :  { %v1516_v56 = vsel %vm828_vm3, %v1515_v55, %v1509_v54 }
 0x4fa   :  { %v1513_v57 = vpop.permute.xlu1 %1512 }
 0x4fb   :  { %v1517_v58 = vsel %vm830_vm4, %v1516_v56, %v1513_v57 }
 0x4fc   :  { %2116 = vmatmul.mubr.msk.f32.vlgmr.msra.gmra.mrb[14].mxu0 %vm60_vm0, %v1517_v58 }
 0x4fd   :  { %2175 = vmatpush3.bf16.msra.mxu0 %v2172_v38 }
 0x4fe   :  { %2177 = vmatprep.subr.bf16.mxu0 %v2176_v41 }
 0x501   :  { %2179 = vmatpush3.bf16.msra.mxu0 %v2176_v41 }
 0x502   :  { %2181 = vmatprep.subr.bf16.mxu0 %v2180_v44 }
 0x505   :  { %2183 = vmatpush3.bf16.msra.mxu0 %v2180_v44 }
 0x506   :  { %2185 = vmatprep.subr.bf16.mxu0 %v2184_v47 }
 0x509   :  { %2187 = vmatpush3.bf16.msra.mxu0 %v2184_v47 }
 0x5cf   :  { %v2117_v60 = vpop.f32.mrb[14].mxu0 }
 0x5d0   :  { %v1607_v61 = vadd.f32 %v2117_v60, %v1943_v59  ;;  %v1601_v62 = vpop.f32.mrb[15].mxu0 }
 0x5d1   :  { %v1602_v63 = vadd.f32 %v1943_v59, %v1601_v62 }
 0x5d2   :  { %v1611_v0 = vadd.f32 %v1607_v61, %v2361_v7 }
 0x5d3   :  { %v1610_v1 = vadd.f32 %v1602_v63, %v2354_v5  ;;  %v1657_v5 = vld [vmem:[%s2613_s8] sm:$0xff] }
 0x5d4   :  { %v1617_v13 = vsel %vm60_vm0, %v1611_v0, 0.0  ;;  %v2164_v18 = vpack.c.bf16 %v1658_v17, %v1657_v5 }
 0x5d5   :  { %1618 = vadd.xlane.f32.xlu1 %v1617_v13  ;;  %v1614_v2 = vsel %vm60_vm0, %v1610_v1, 0.0 }
 0x5d6   :  { %1615 = vadd.xlane.f32.xlu0 %v1614_v2  ;;  %2165 = vmatprep.subr.bf16.mxu1 %v2164_v18 }
 0x5d7   :  { %2167 = vmatpush3.bf16.msra.mxu1 %v2164_v18 }
 0x5d8   :  { %2169 = vmatprep.subr.bf16.mxu1 %v2168_v21 }
 0x5db   :  { %2171 = vmatpush3.bf16.msra.mxu1 %v2168_v21 }
 0x662   :  { %v1619_v3 = vpop.xlane.xlu1 %1618 }
 0x663   :  { %v1622_v4 = vmul.f32 0.03125, %v1619_v3  ;;  %v1616_v6 = vpop.xlane.xlu0 %1615 }
 0x664   :  { %v1621_v9 = vmul.f32 0.03125, %v1616_v6 }
 0x665   :  { %v1624_v10 = vsub.f32 %v1611_v0, %v1622_v4 }
 0x666   :  { %v1623_v11 = vsub.f32 %v1610_v1, %v1621_v9  ;;  %v1951_v9 = vld [vmem:[%s2618_s11] ss:$0 sm:$0xff] }
 0x667   :  { %v1626_v16 = vmul.f32 %v1624_v10, %v1624_v10 }
 0x668   :  { %v1625_v14 = vmul.f32 %v1623_v11, %v1623_v11 }
 0x669   :  { %v1630_v7 = vsel %vm60_vm0, %v1626_v16, 0.0 }
 0x66a   :  { %v1627_v15 = vsel %vm60_vm0, %v1625_v14, 0.0 }
 0x66b   :  { %1628 = vadd.xlane.f32.xlu0 %v1627_v15 }
 0x66f   :  { %1631 = vadd.xlane.f32.xlu0 %v1630_v7 }
 0x6f8   :  { %v1629_v22 = vpop.xlane.xlu0 %1628 }
 0x6f9   :  { %v1633_v23 = vmul.f32 0.03125, %v1629_v22 }
 0x6fb   :  { %v1635_v24 = vadd.f32 1e-12, %v1633_v23 }
 0x6fc   :  { %v1632_v25 = vpop.xlane.xlu0 %1631 }
 0x6fd   :  { %2236 = vrsqrt.f32 %v1635_v24  ;;  %v1634_v26 = vmul.f32 0.03125, %v1632_v25 }
 0x6ff   :  { %v1636_v27 = vadd.f32 1e-12, %v1634_v26 }
 0x701   :  { %2238 = vrsqrt.f32 %v1636_v27 }
 0x707   :  { %v2237_v28 = vpop.eup %2236 }
 0x708   :  { %v1639_v30 = vmul.f32 %v2237_v28, %v1623_v11 }
 0x70a   :  { %v1647_v31 = vmul.f32 %v1946_v29, %v1639_v30 }
 0x70b   :  { %v2239_v32 = vpop.eup %2238 }
 0x70c   :  { %v1640_v33 = vmul.f32 %v2239_v32, %v1624_v10  ;;  %v1655_v8 = vadd.f32 %v1947_v12, %v1647_v31 }
 0x70e   :  { %v1648_v34 = vmul.f32 %v1946_v29, %v1640_v33  ;;  %2126 = vmatprep.mubr.msk.f32.mxu1 %vm60_vm0, %v1655_v8 }
 0x710   :  { %v1656_v35 = vadd.f32 %v1947_v12, %v1648_v34 }
 0x712   :  { %2127 = vmatmul.mubr.msk.f32.vlgmr.msra.gmra.mrb[20].mxu1 %vm60_vm0, %v1656_v35 }
 0x7e5   :  { %v2128_v49 = vpop.f32.mrb[20].mxu1 }
 0x7e6   :  { %v1746_v50 = vadd.f32 %v2128_v49, %v1948_v48  ;;  %v1740_v51 = vpop.f32.mrb[21].mxu1 }
 0x7e7   :  { %v1741_v52 = vadd.f32 %v1948_v48, %v1740_v51 }
 0x7e8   :  { %v1750_v53 = vmul.f32 %v1746_v50, %v1746_v50 }
 0x7e9   :  { %v1749_v54 = vmul.f32 %v1741_v52, %v1741_v52 }
 0x7ea   :  { %v1752_v55 = vmul.f32 %v1750_v53, %v1746_v50 }
 0x7eb   :  { %v1751_v56 = vmul.f32 %v1749_v54, %v1741_v52 }
 0x7ec   :  { %v1754_v57 = vmul.f32 0.044715, %v1752_v55 }
 0x7ed   :  { %v1753_v58 = vmul.f32 0.044715, %v1751_v56 }
 0x7ee   :  { %v1756_v59 = vadd.f32 %v1754_v57, %v1746_v50 }
 0x7ef   :  { %v1755_v60 = vadd.f32 %v1753_v58, %v1741_v52 }
 0x7f0   :  { %v1758_v61 = vmul.f32 0.7978846, %v1756_v59 }
 0x7f1   :  { %v1757_v62 = vmul.f32 0.7978846, %v1755_v60 }
 0x7f2   :  { %2240 = vtanh.f32 %v1758_v61 }
 0x7f3   :  { %2242 = vtanh.f32 %v1757_v62 }
 0x7fc   :  { %v2241_v63 = vpop.eup %2240 }
 0x7fd   :  { %v2243_v0 = vpop.eup %2242  ;;  %v1762_v1 = vadd.f32 1.0, %v2241_v63 }
 0x7fe   :  { %v1761_v13 = vadd.f32 1.0, %v2243_v0 }
 0x7ff   :  { %v1764_v2 = vmul.f32 0.5, %v1762_v1 }
 0x800   :  { %v1763_v3 = vmul.f32 0.5, %v1761_v13 }
 0x801   :  { %v1766_v6 = vmul.f32 %v1764_v2, %v1746_v50 }
 0x802   :  { %v1765_v4 = vmul.f32 %v1763_v3, %v1741_v52 }
 0x804   :  { %2145 = vmatprep.mubr.msk.f32.mxu0 %vm1782_vm5, %v1765_v4 }
 0x805   :  { %2146 = vmatmul.mubr.msk.f32.vlgmr.msra.gmra.mrb[16].mxu0 %vm1782_vm5, %v1766_v6 }
 0x8d8   :  { %v2147_v10 = vpop.f32.mrb[16].mxu0 }
 0x8d9   :  { %v1861_v11 = vadd.f32 %v2147_v10, %v1951_v9  ;;  %v1855_v14 = vpop.f32.mrb[17].mxu0 }
 0x8da   :  { %v1856_v15 = vadd.f32 %v1951_v9, %v1855_v14 }
 0x8db   :  { %v1865_v16 = vadd.f32 %v1861_v11, %v1656_v35 }
 0x8dc   :  { %v1864_v7 = vadd.f32 %v1856_v15, %v1655_v8  ;;  %v1954_v8 = vld [vmem:[%s2619_s12] ss:$0 sm:$0xff] }
 0x8dd   :  { %v1871_v5 = vsel %vm60_vm0, %v1865_v16, 0.0 }
 0x8de   :  { %1872 = vadd.xlane.f32.xlu0 %v1871_v5  ;;  %v1868_v17 = vsel %vm60_vm0, %v1864_v7, 0.0 }
 0x8df   :  { %1869 = vadd.xlane.f32.xlu1 %v1868_v17 }
 0x96b   :  { %v1873_v18 = vpop.xlane.xlu0 %1872 }
 0x96c   :  { %v1875_v19 = vmul.f32 0.03125, %v1873_v18  ;;  %v1870_v20 = vpop.xlane.xlu1 %1869 }
 0x96d   :  { %v1874_v21 = vmul.f32 0.03125, %v1870_v20 }
 0x96e   :  { %v1877_v22 = vsub.f32 %v1865_v16, %v1875_v19 }
 0x96f   :  { %v1876_v23 = vsub.f32 %v1864_v7, %v1874_v21 }
 0x970   :  { %v1879_v24 = vmul.f32 %v1877_v22, %v1877_v22 }
 0x971   :  { %v1878_v25 = vmul.f32 %v1876_v23, %v1876_v23 }
 0x972   :  { %v1883_v26 = vsel %vm60_vm0, %v1879_v24, 0.0 }
 0x973   :  { %1884 = vadd.xlane.f32.xlu0 %v1883_v26  ;;  %v1880_v27 = vsel %vm60_vm0, %v1878_v25, 0.0 }
 0x974   :  { %1881 = vadd.xlane.f32.xlu1 %v1880_v27 }
 0xa00   :  { %v1885_v28 = vpop.xlane.xlu0 %1884 }
 0xa01   :  { %v1887_v29 = vmul.f32 0.03125, %v1885_v28  ;;  %v1882_v30 = vpop.xlane.xlu1 %1881 }
 0xa02   :  { %v1886_v12 = vmul.f32 0.03125, %v1882_v30 }
 0xa03   :  { %v1889_v31 = vadd.f32 1e-12, %v1887_v29 }
 0xa04   :  { %v1888_v32 = vadd.f32 1e-12, %v1886_v12 }
 0xa05   :  { %2244 = vrsqrt.f32 %v1889_v31 }
 0xa06   :  { %2246 = vrsqrt.f32 %v1888_v32 }
 0xa0f   :  { %v2245_v33 = vpop.eup %2244 }
 0xa10   :  { %v2247_v34 = vpop.eup %2246  ;;  %v1893_v35 = vmul.f32 %v2245_v33, %v1877_v22 }
 0xa11   :  { %v1892_v37 = vmul.f32 %v2247_v34, %v1876_v23 }
 0xa12   :  { %v1901_v38 = vmul.f32 %v1954_v8, %v1893_v35 }
 0xa13   :  { %v1900_v39 = vmul.f32 %v1954_v8, %v1892_v37 }
 0xa14   :  { %v1909_v40 = vadd.f32 %v1955_v36, %v1901_v38 }
 0xa15   :  { %v1908_v41 = vadd.f32 %v1955_v36, %v1900_v39 }
 0xa16   :  { %1911 = vst.msk [vmem:[%s2621_s14 + $0x8] sm:$0xff] %vm60_vm0, %v1909_v40 }
 0xa17   :  { %1910 = vst.msk [vmem:[%s2621_s14] sm:$0xff] %vm60_vm0, %v1908_v41 }

</bundles_post_ra>
